<compile_context>
chip_gen: v7x
topology: tpu7x:2x2x1
jax: 0.10.0
libtpu: 0.0.40
codegen_flags: <defaults>
</compile_context>

<pallas_src>
import functools

import jax
import jax.numpy as jnp
from jax.experimental import pallas as pl
from jax.experimental.pallas import tpu as pltpu

EPS = 1e-5
LANE = 128
DIMS = ((512, 128), (128, 64), (64, 2))   # logical (in, out) features per layer
FEAT = (512, 128, 128, 128)               # lane-padded activation widths x,h1,h2,logits
NUM_CLASSES = DIMS[-1][1]                 # 2
N_OUT_PAD = FEAT[-1]                      # padded width of the final logits slab


def _build_segments():
    """Lane-aligned offsets of each vector param inside the packed (1, P) blob."""
    seg, off = {}, 0
    for i in range(3):
        seg[f"gamma{i}"] = (off, FEAT[i]); off += FEAT[i]
        seg[f"beta{i}"] = (off, FEAT[i]); off += FEAT[i]
    for i in range(3):
        seg[f"bias{i}"] = (off, FEAT[i + 1]); off += FEAT[i + 1]
    return seg, off


SEG, VPARAMS_LEN = _build_segments()      # 1920 = 15 * 128 (lane aligned)


# ----------------------------------------------------------------------------
# Generation-aware VMEM budgeting (v7x: 64 MiB physical; v5e/v6e: 128 MiB)
# ----------------------------------------------------------------------------
def _vmem_budget_bytes():
    cap = 64 * 1024 * 1024                       # conservative default (v7x)
    try:
        info = pltpu.get_tpu_info()
        cap = int(getattr(info, "vmem_capacity_bytes", cap))
    except Exception:
        pass
    # Leave headroom for double buffering / compiler scratch.
    return max(32 * 1024 * 1024, min(3 * cap // 4, 100 * 1024 * 1024))


_FUSED_BYTES_PER_ROW = 8 * 1024   # x + out + in-kernel temporaries, with slack


def _max_fused_rows():
    """Largest batch the single fused kernel keeps resident in VMEM."""
    return _vmem_budget_bytes() // _FUSED_BYTES_PER_ROW


# ----------------------------------------------------------------------------
# Shared in-kernel helpers
# ----------------------------------------------------------------------------
def _masked_softmax(h, num_classes):
    """Softmax over the first `num_classes` lanes of a lane-dense slab."""
    lane = jax.lax.broadcasted_iota(jnp.int32, h.shape, 1)
    h = jnp.where(lane < num_classes, h, -jnp.inf)      # padded lanes -> exp()=0
    m = jnp.max(h, axis=1, keepdims=True)
    e = jnp.exp(h - m)
    denom = jnp.sum(e, axis=1, keepdims=True)
    return e * pl.reciprocal(denom, approx=True)        # EUP vrcp, no VALU divide


def _fold_bn(col_sum, col_sq, gamma, beta, inv_n):
    """Fold training-mode BatchNorm1d into one FMA: xn = x * scale + shift."""
    mean = col_sum * inv_n
    var = jnp.maximum(col_sq * inv_n - mean * mean, 0.0)   # biased variance
    scale = gamma * jax.lax.rsqrt(var + EPS)
    shift = beta - mean * scale
    return scale, shift


def _mxu_col_stats(h):
    """Column sum / sum-of-squares via the MXU ones-vector trick
    (keeps the cross-sublane batch reduction off the VPU/XLU slots)."""
    ones = jnp.ones((1, h.shape[0]), jnp.float32)
    return (jnp.dot(ones, h, preferred_element_type=jnp.float32),
            jnp.dot(ones, h * h, preferred_element_type=jnp.float32))


# ----------------------------------------------------------------------------
# Fused path: one kernel, whole batch resident in VMEM (x read from HBM once)
# ----------------------------------------------------------------------------
def _fused_kernel(alphas_ref, x_ref, vp_ref, w0_ref, w1_ref, w2_ref, o_ref, *,
                  mm_dtype, inv_n):
    w_refs = (w0_ref, w1_ref, w2_ref)

    def layer(h, li):
        col_sum, col_sq = _mxu_col_stats(h)
        go, gn = SEG[f"gamma{li}"]
        bo, bn = SEG[f"beta{li}"]
        io, iw = SEG[f"bias{li}"]
        scale, shift = _fold_bn(col_sum, col_sq,
                                vp_ref[:, go:go + gn], vp_ref[:, bo:bo + bn],
                                inv_n)
        hn = h * scale + shift                               # BN as one FMA
        y = jnp.dot(hn.astype(mm_dtype), w_refs[li][...].astype(mm_dtype),
                    preferred_element_type=jnp.float32) + vp_ref[:, io:io + iw]
        alpha = alphas_ref[li]                               # scalar read from SMEM
        return jnp.where(y >= 0.0, y, alpha * y)             # PReLU (single alpha)

    h = x_ref[...].astype(jnp.float32)
    for li in range(3):
        h = layer(h, li)
    o_ref[...] = _masked_softmax(h, NUM_CLASSES).astype(o_ref.dtype)


def mlp_forward_fused(x, packed, *, mm_dtype=jnp.float32):
    b = x.shape[0]
    vmem = pl.BlockSpec(memory_space=pltpu.MemorySpace.VMEM)
    smem = pl.BlockSpec(memory_space=pltpu.MemorySpace.SMEM)
    flops = (2 * b * (FEAT[0] * FEAT[1] + FEAT[1] * FEAT[2] + FEAT[2] * FEAT[3])
             + 16 * b * sum(FEAT))
    bytes_acc = (4 * b * (FEAT[0] + FEAT[3])
                 + 4 * sum(FEAT[i] * FEAT[i + 1] for i in range(3))
                 + 4 * VPARAMS_LEN)
    out = pl.pallas_call(
        functools.partial(_fused_kernel, mm_dtype=mm_dtype, inv_n=1.0 / float(b)),
        out_shape=jax.ShapeDtypeStruct((b, N_OUT_PAD), jnp.float32),
        in_specs=[smem, vmem, vmem, vmem, vmem, vmem],
        out_specs=vmem,
        compiler_params=pltpu.CompilerParams(vmem_limit_bytes=_vmem_budget_bytes()),
        cost_estimate=pl.CostEstimate(flops=flops,
                                      transcendentals=b * FEAT[3] + sum(FEAT),
                                      bytes_accessed=bytes_acc),
    )(packed["alphas"], x, packed["vparams"],
      packed["w"][0], packed["w"][1], packed["w"][2])
    return out[:, :NUM_CLASSES]


# ----------------------------------------------------------------------------
# Tiled path: 4 HBM activation passes
#   pass 0: stats(x);  pass 1: apply L0 + stats(h1);  pass 2: apply L1 + stats(h2);
#   pass 3: apply L2 + masked softmax
# ----------------------------------------------------------------------------
def _stats_kernel(x_ref, sum_ref, sq_ref):
    @pl.when(pl.program_id(0) == 0)
    def _init():
        sum_ref[...] = jnp.zeros_like(sum_ref)
        sq_ref[...] = jnp.zeros_like(sq_ref)

    x = x_ref[...].astype(jnp.float32)
    s, q = _mxu_col_stats(x)
    sum_ref[...] += s
    sq_ref[...] += q


def _apply_stats_kernel(alpha_ref, x_ref, sum_ref, sq_ref, gamma_ref, beta_ref,
                        w_ref, bias_ref, h_ref, nsum_ref, nsq_ref, *,
                        mm_dtype, inv_n):
    """BN(folded) -> Linear -> PReLU on one batch tile, plus accumulation of the
    NEXT layer's BN statistics (no separate stats pass over the activations)."""
    @pl.when(pl.program_id(0) == 0)
    def _init():
        nsum_ref[...] = jnp.zeros_like(nsum_ref)
        nsq_ref[...] = jnp.zeros_like(nsq_ref)

    x = x_ref[...].astype(jnp.float32)
    scale, shift = _fold_bn(sum_ref[...], sq_ref[...],
                            gamma_ref[...], beta_ref[...], inv_n)
    xn = x * scale + shift
    y = jnp.dot(xn.astype(mm_dtype), w_ref[...].astype(mm_dtype),
                preferred_element_type=jnp.float32) + bias_ref[...]
    alpha = alpha_ref[0]
    h = jnp.where(y >= 0.0, y, alpha * y)                    # PReLU
    h_ref[...] = h.astype(h_ref.dtype)                       # bf16/f32 lane-dense store
    s, q = _mxu_col_stats(h)                                 # f32 stats, pre-cast
    nsum_ref[...] += s
    nsq_ref[...] += q


def _final_kernel(alpha_ref, x_ref, sum_ref, sq_ref, gamma_ref, beta_ref,
                  w_ref, bias_ref, o_ref, *, mm_dtype, inv_n, num_classes):
    x = x_ref[...].astype(jnp.float32)
    scale, shift = _fold_bn(sum_ref[...], sq_ref[...],
                            gamma_ref[...], beta_ref[...], inv_n)
    xn = x * scale + shift
    y = jnp.dot(xn.astype(mm_dtype), w_ref[...].astype(mm_dtype),
                preferred_element_type=jnp.float32) + bias_ref[...]
    alpha = alpha_ref[0]
    h = jnp.where(y >= 0.0, y, alpha * y)
    o_ref[...] = _masked_softmax(h, num_classes).astype(o_ref.dtype)


def mlp_forward_tiled(x, packed, *, batch_tile=2048, act_dtype=jnp.bfloat16,
                      mm_dtype=jnp.float32):
    b, f0 = x.shape
    assert f0 == FEAT[0]
    if b % batch_tile != 0:
        # TODO(synk): ragged last tile (mask padded rows out of the stats sums).
        raise ValueError(f"batch ({b}) must be divisible by batch_tile ({batch_tile})")
    grid = (b // batch_tile,)
    inv_n = 1.0 / float(b)
    vmem_limit = _vmem_budget_bytes()
    smem = pl.BlockSpec(memory_space=pltpu.MemorySpace.SMEM)
    act_bytes = 2 if act_dtype == jnp.bfloat16 else 4

    # Pass 0: column stats of x (the only dedicated stats pass).
    # TODO(synk): v7x dual-TC variant -- leading size-2 "parallel" axis with
    # per-core partial (sum, sumsq) blocks reduced inside the first apply kernel.
    col_sum, col_sq = pl.pallas_call(
        _stats_kernel,
        out_shape=(jax.ShapeDtypeStruct((1, f0), jnp.float32),
                   jax.ShapeDtypeStruct((1, f0), jnp.float32)),
        grid=grid,
        in_specs=[pl.BlockSpec((batch_tile, f0), lambda i: (i, 0))],
        out_specs=(pl.BlockSpec((1, f0), lambda i: (0, 0)),
                   pl.BlockSpec((1, f0), lambda i: (0, 0))),
        compiler_params=pltpu.CompilerParams(
            dimension_semantics=("arbitrary",), vmem_limit_bytes=vmem_limit),
        cost_estimate=pl.CostEstimate(flops=4 * b * f0, transcendentals=0,
                                      bytes_accessed=4 * b * f0 + 8 * f0),
    )(x)

    h = x
    for li in range(2):                       # layers 0 and 1: apply + next stats
        fi, fo = FEAT[li], FEAT[li + 1]
        in_bytes = h.dtype.itemsize
        h, col_sum, col_sq = pl.pallas_call(
            functools.partial(_apply_stats_kernel, mm_dtype=mm_dtype, inv_n=inv_n),
            out_shape=(jax.ShapeDtypeStruct((b, fo), act_dtype),
                       jax.ShapeDtypeStruct((1, fo), jnp.float32),
                       jax.ShapeDtypeStruct((1, fo), jnp.float32)),
            grid=grid,
            in_specs=[smem,                                       # PReLU alpha (1,)
                      pl.BlockSpec((batch_tile, fi), lambda i: (i, 0)),
                      pl.BlockSpec((1, fi), lambda i: (0, 0)),    # col_sum (this layer)
                      pl.BlockSpec((1, fi), lambda i: (0, 0)),    # col_sq
                      pl.BlockSpec((1, fi), lambda i: (0, 0)),    # gamma
                      pl.BlockSpec((1, fi), lambda i: (0, 0)),    # beta
                      pl.BlockSpec((fi, fo), lambda i: (0, 0)),   # weight (resident)
                      pl.BlockSpec((1, fo), lambda i: (0, 0))],   # bias
            out_specs=(pl.BlockSpec((batch_tile, fo), lambda i: (i, 0)),
                       pl.BlockSpec((1, fo), lambda i: (0, 0)),   # next-layer col_sum
                       pl.BlockSpec((1, fo), lambda i: (0, 0))),  # next-layer col_sq
            compiler_params=pltpu.CompilerParams(
                dimension_semantics=("arbitrary",),               # stats accumulators
                vmem_limit_bytes=vmem_limit),
            cost_estimate=pl.CostEstimate(
                flops=2 * b * fi * fo + 4 * b * fo + 8 * b * fi,
                transcendentals=fi,
                bytes_accessed=b * (fi * in_bytes + fo * act_bytes) + 4 * fi * fo),
        )(packed["alphas"][li:li + 1], h, col_sum, col_sq,
          packed["gammas"][li], packed["betas"][li],
          packed["w"][li], packed["biases"][li])

    # Final layer: apply + masked softmax; independent tiles -> megacore parallel.
    fi, fo = FEAT[2], FEAT[3]
    out = pl.pallas_call(
        functools.partial(_final_kernel, mm_dtype=mm_dtype, inv_n=inv_n,
                          num_classes=NUM_CLASSES),
        out_shape=jax.ShapeDtypeStruct((b, fo), jnp.float32),
        grid=grid,
        in_specs=[smem,
                  pl.BlockSpec((batch_tile, fi), lambda i: (i, 0)),
                  pl.BlockSpec((1, fi), lambda i: (0, 0)),
                  pl.BlockSpec((1, fi), lambda i: (0, 0)),
                  pl.BlockSpec((1, fi), lambda i: (0, 0)),
                  pl.BlockSpec((1, fi), lambda i: (0, 0)),
                  pl.BlockSpec((fi, fo), lambda i: (0, 0)),
                  pl.BlockSpec((1, fo), lambda i: (0, 0))],
        out_specs=pl.BlockSpec((batch_tile, fo), lambda i: (i, 0)),
        compiler_params=pltpu.CompilerParams(
            dimension_semantics=("parallel",), vmem_limit_bytes=vmem_limit),
        cost_estimate=pl.CostEstimate(
            flops=2 * b * fi * fo + 10 * b * fo,
            transcendentals=b * fo + fi,
            bytes_accessed=b * (fi * act_bytes + fo * 4) + 4 * fi * fo),
    )(packed["alphas"][2:3], h, col_sum, col_sq,
      packed["gammas"][2], packed["betas"][2], packed["w"][2], packed["biases"][2])
    return out[:, :NUM_CLASSES]


def mlp_forward(x, packed, *, batch_tile=2048, act_dtype=jnp.bfloat16,
                mm_dtype=jnp.float32):
    """x: [B, 512] f32 -> [B, 2] softmax probabilities (training-mode BN)."""
    b = x.shape[0]
    if b <= _max_fused_rows():          # whole batch fits VMEM -> read x once
        return mlp_forward_fused(x, packed, mm_dtype=mm_dtype)
    return mlp_forward_tiled(x, packed, batch_tile=batch_tile,
                             act_dtype=act_dtype, mm_dtype=mm_dtype)


# ----------------------------------------------------------------------------
# Parameter construction / packing / reference
# ----------------------------------------------------------------------------
def init_params(key):
    """Module parameters.  Linear: U(+-1/sqrt(in)); PReLU alpha = 0.25 (PyTorch
    default); BN gamma/beta randomized (instead of the 1/0 defaults) purely to
    exercise the folded-BN path in the correctness check."""
    params = []
    for i, (fi, fo) in enumerate(DIMS):
        kg, kbe, kw, kb = jax.random.split(jax.random.fold_in(key, i), 4)
        bound = float(fi) ** -0.5
        gamma = jax.random.uniform(kg, (1, fi), jnp.float32, 0.5, 1.5)
        beta = jax.random.uniform(kbe, (1, fi), jnp.float32, -0.5, 0.5)
        # Stored already transposed to (in, out) so the kernels do x @ W directly.
        w = jax.random.uniform(kw, (fi, fo), jnp.float32, -bound, bound)
        b = jax.random.uniform(kb, (1, fo), jnp.float32, -bound, bound)
        alpha = jnp.float32(0.25)
        params.append((gamma, beta, w, b, alpha))
    return params


def pack_params(params):
    """One-time repack: lane-pad every layer to 128 output lanes and build the
    single packed vector-param blob for the fused kernel."""
    vp = jnp.zeros((1, VPARAMS_LEN), jnp.float32)
    ws, biases, gammas, betas, alphas = [], [], [], [], []
    for i, (g, be, w, b, a) in enumerate(params):
        fi, fo = DIMS[i]
        fip, fop = FEAT[i], FEAT[i + 1]
        gp = jnp.zeros((1, fip), jnp.float32).at[:, :fi].set(g)
        bep = jnp.zeros((1, fip), jnp.float32).at[:, :fi].set(be)
        wp = jnp.zeros((fip, fop), jnp.float32).at[:fi, :fo].set(w)
        bp = jnp.zeros((1, fop), jnp.float32).at[:, :fo].set(b)
        o, n = SEG[f"gamma{i}"]
        vp = vp.at[0, o:o + n].set(gp.reshape(-1))
        o, n = SEG[f"beta{i}"]
        vp = vp.at[0, o:o + n].set(bep.reshape(-1))
        o, n = SEG[f"bias{i}"]
        vp = vp.at[0, o:o + n].set(bp.reshape(-1))
        ws.append(wp)
        biases.append(bp)
        gammas.append(gp)
        betas.append(bep)
        alphas.append(jnp.asarray(a, jnp.float32).reshape(()))
    return {"vparams": vp, "w": ws, "biases": biases,
            "gammas": gammas, "betas": betas, "alphas": jnp.stack(alphas)}


def mlp_reference(x, params):
    h = x
    for (g, be, w, b, a) in params:
        mean = jnp.mean(h, axis=0, keepdims=True)
        var = jnp.mean((h - mean) ** 2, axis=0, keepdims=True)
        hn = (h - mean) / jnp.sqrt(var + EPS) * g + be
        y = hn @ w + b
        h = jnp.where(y >= 0.0, y, a * y)
    return jax.nn.softmax(h, axis=1)


if __name__ == "__main__":
    key = jax.random.PRNGKey(0)
    kx, kp = jax.random.split(key)
    params = init_params(kp)
    packed = pack_params(params)

    # --- small batch: fused single-kernel path (whole batch resident in VMEM) ---
    B = 64
    x = jax.random.normal(kx, (B, 512), jnp.float32)
    out = jax.block_until_ready(mlp_forward(x, packed))
    ref = mlp_reference(x, params)
    assert out.shape == (B, NUM_CLASSES)
    assert jnp.allclose(jnp.sum(out, axis=1), 1.0, atol=5e-3)
    assert jnp.allclose(out, ref, atol=5e-3, rtol=5e-3)

    # --- larger batch: tiled path (stats fused into the apply kernels) ---
    B2 = 256
    x2 = jax.random.normal(jax.random.fold_in(kx, 1), (B2, 512), jnp.float32)
    # f32 intermediate activations: tight check against the f32 reference.
    out2 = jax.block_until_ready(
        mlp_forward_tiled(x2, packed, batch_tile=128, act_dtype=jnp.float32))
    ref2 = mlp_reference(x2, params)
    assert out2.shape == (B2, NUM_CLASSES)
    assert jnp.allclose(jnp.sum(out2, axis=1), 1.0, atol=5e-3)
    assert jnp.allclose(out2, ref2, atol=5e-3, rtol=5e-3)

    # bf16 intermediate activations (production default, halves HBM traffic):
    # looser tolerance to account for the bf16 quantization of h1/h2.
    out3 = jax.block_until_ready(
        mlp_forward_tiled(x2, packed, batch_tile=128, act_dtype=jnp.bfloat16))
    assert out3.shape == (B2, NUM_CLASSES)
    assert jnp.allclose(jnp.sum(out3, axis=1), 1.0, atol=5e-3)
    assert jnp.allclose(out3, ref2, atol=2e-2, rtol=2e-2)

    print("KERNEL_OK")
</pallas_src>

<mosaic_0001>
module attributes {stable_mosaic.version = 11 : i64} {
  func.func @_fused_kernel(%arg0: memref<3xf32, #tpu.memory_space<smem>>, %arg1: memref<64x512xf32, #tpu.memory_space<vmem>>, %arg2: memref<1x1920xf32, #tpu.memory_space<vmem>>, %arg3: memref<512x128xf32, #tpu.memory_space<vmem>>, %arg4: memref<128x128xf32, #tpu.memory_space<vmem>>, %arg5: memref<128x128xf32, #tpu.memory_space<vmem>>, %arg6: memref<64x128xf32, #tpu.memory_space<vmem>>) attributes {dimension_semantics = [], scalar_prefetch = 0 : i64, scratch_operands = 0 : i64, tpu.core_type = #tpu.core_type<tc>} {
    %c0 = arith.constant 0 : index
    %c0_0 = arith.constant 0 : index
    %0 = vector.load %arg1[%c0, %c0_0] : memref<64x512xf32, #tpu.memory_space<vmem>>, vector<64x512xf32>
    %cst = arith.constant 1.000000e+00 : f32
    %1 = vector.broadcast %cst : f32 to vector<1x64xf32>
    %cst_1 = arith.constant dense<0.000000e+00> : vector<1x512xf32>
    %2 = tpu.matmul %1, %0, %cst_1 {dimension_numbers = #tpu.dot_dimension_numbers<[1], [0], [0], [1], [0, 0, 1, 1], [], []>} : vector<1x64xf32>, vector<64x512xf32>, vector<1x512xf32> -> vector<1x512xf32>
    %3 = arith.mulf %0, %0 : vector<64x512xf32>
    %cst_2 = arith.constant dense<0.000000e+00> : vector<1x512xf32>
    %4 = tpu.matmul %1, %3, %cst_2 {dimension_numbers = #tpu.dot_dimension_numbers<[1], [0], [0], [1], [0, 0, 1, 1], [], []>} : vector<1x64xf32>, vector<64x512xf32>, vector<1x512xf32> -> vector<1x512xf32>
    %c0_3 = arith.constant 0 : index
    %c0_4 = arith.constant 0 : index
    %5 = vector.load %arg2[%c0_3, %c0_4] : memref<1x1920xf32, #tpu.memory_space<vmem>>, vector<1x512xf32>
    %c0_5 = arith.constant 0 : index
    %c512 = arith.constant 512 : index
    %6 = vector.load %arg2[%c0_5, %c512] : memref<1x1920xf32, #tpu.memory_space<vmem>>, vector<1x512xf32>
    %cst_6 = arith.constant 1.562500e-02 : f32
    %7 = vector.broadcast %cst_6 : f32 to vector<1x512xf32>
    %8 = arith.mulf %2, %7 : vector<1x512xf32>
    %cst_7 = arith.constant 1.562500e-02 : f32
    %9 = vector.broadcast %cst_7 : f32 to vector<1x512xf32>
    %10 = arith.mulf %4, %9 : vector<1x512xf32>
    %11 = arith.mulf %8, %8 : vector<1x512xf32>
    %12 = arith.subf %10, %11 : vector<1x512xf32>
    %cst_8 = arith.constant 0.000000e+00 : f32
    %13 = vector.broadcast %cst_8 : f32 to vector<1x512xf32>
    %14 = arith.maximumf %12, %13 : vector<1x512xf32>
    %cst_9 = arith.constant 9.99999974E-6 : f32
    %15 = vector.broadcast %cst_9 : f32 to vector<1x512xf32>
    %16 = arith.addf %14, %15 : vector<1x512xf32>
    %17 = math.rsqrt %16 : vector<1x512xf32>
    %18 = arith.mulf %5, %17 : vector<1x512xf32>
    %19 = arith.mulf %8, %18 : vector<1x512xf32>
    %20 = arith.subf %6, %19 : vector<1x512xf32>
    %21 = vector.broadcast %18 : vector<1x512xf32> to vector<64x512xf32>
    %22 = arith.mulf %0, %21 : vector<64x512xf32>
    %23 = vector.broadcast %20 : vector<1x512xf32> to vector<64x512xf32>
    %24 = arith.addf %22, %23 : vector<64x512xf32>
    %c0_10 = arith.constant 0 : index
    %c0_11 = arith.constant 0 : index
    %25 = vector.load %arg3[%c0_10, %c0_11] : memref<512x128xf32, #tpu.memory_space<vmem>>, vector<512x128xf32>
    %cst_12 = arith.constant dense<0.000000e+00> : vector<64x128xf32>
    %26 = tpu.matmul %24, %25, %cst_12 {dimension_numbers = #tpu.dot_dimension_numbers<[1], [0], [0], [1], [0, 0, 1, 1], [], []>} : vector<64x512xf32>, vector<512x128xf32>, vector<64x128xf32> -> vector<64x128xf32>
    %c0_13 = arith.constant 0 : index
    %c1536 = arith.constant 1536 : index
    %27 = vector.load %arg2[%c0_13, %c1536] : memref<1x1920xf32, #tpu.memory_space<vmem>>, vector<1x128xf32>
    %28 = vector.broadcast %27 : vector<1x128xf32> to vector<64x128xf32>
    %29 = arith.addf %26, %28 : vector<64x128xf32>
    %c0_14 = arith.constant 0 : index
    %30 = memref.load %arg0[%c0_14] : memref<3xf32, #tpu.memory_space<smem>>
    %cst_15 = arith.constant 0.000000e+00 : f32
    %31 = vector.broadcast %cst_15 : f32 to vector<64x128xf32>
    %32 = arith.cmpf oge, %29, %31 : vector<64x128xf32>
    %33 = vector.broadcast %30 : f32 to vector<64x128xf32>
    %34 = arith.mulf %33, %29 : vector<64x128xf32>
    %35 = arith.select %32, %29, %34 : vector<64x128xi1>, vector<64x128xf32>
    %cst_16 = arith.constant 1.000000e+00 : f32
    %36 = vector.broadcast %cst_16 : f32 to vector<1x64xf32>
    %cst_17 = arith.constant dense<0.000000e+00> : vector<1x128xf32>
    %37 = tpu.matmul %36, %35, %cst_17 {dimension_numbers = #tpu.dot_dimension_numbers<[1], [0], [0], [1], [0, 0, 1, 1], [], []>} : vector<1x64xf32>, vector<64x128xf32>, vector<1x128xf32> -> vector<1x128xf32>
    %38 = arith.mulf %35, %35 : vector<64x128xf32>
    %cst_18 = arith.constant dense<0.000000e+00> : vector<1x128xf32>
    %39 = tpu.matmul %36, %38, %cst_18 {dimension_numbers = #tpu.dot_dimension_numbers<[1], [0], [0], [1], [0, 0, 1, 1], [], []>} : vector<1x64xf32>, vector<64x128xf32>, vector<1x128xf32> -> vector<1x128xf32>
    %c0_19 = arith.constant 0 : index
    %c1024 = arith.constant 1024 : index
    %40 = vector.load %arg2[%c0_19, %c1024] : memref<1x1920xf32, #tpu.memory_space<vmem>>, vector<1x128xf32>
    %c0_20 = arith.constant 0 : index
    %c1152 = arith.constant 1152 : index
    %41 = vector.load %arg2[%c0_20, %c1152] : memref<1x1920xf32, #tpu.memory_space<vmem>>, vector<1x128xf32>
    %cst_21 = arith.constant 1.562500e-02 : f32
    %42 = vector.broadcast %cst_21 : f32 to vector<1x128xf32>
    %43 = arith.mulf %37, %42 : vector<1x128xf32>
    %cst_22 = arith.constant 1.562500e-02 : f32
    %44 = vector.broadcast %cst_22 : f32 to vector<1x128xf32>
    %45 = arith.mulf %39, %44 : vector<1x128xf32>
    %46 = arith.mulf %43, %43 : vector<1x128xf32>
    %47 = arith.subf %45, %46 : vector<1x128xf32>
    %cst_23 = arith.constant 0.000000e+00 : f32
    %48 = vector.broadcast %cst_23 : f32 to vector<1x128xf32>
    %49 = arith.maximumf %47, %48 : vector<1x128xf32>
    %cst_24 = arith.constant 9.99999974E-6 : f32
    %50 = vector.broadcast %cst_24 : f32 to vector<1x128xf32>
    %51 = arith.addf %49, %50 : vector<1x128xf32>
    %52 = math.rsqrt %51 : vector<1x128xf32>
    %53 = arith.mulf %40, %52 : vector<1x128xf32>
    %54 = arith.mulf %43, %53 : vector<1x128xf32>
    %55 = arith.subf %41, %54 : vector<1x128xf32>
    %56 = vector.broadcast %53 : vector<1x128xf32> to vector<64x128xf32>
    %57 = arith.mulf %35, %56 : vector<64x128xf32>
    %58 = vector.broadcast %55 : vector<1x128xf32> to vector<64x128xf32>
    %59 = arith.addf %57, %58 : vector<64x128xf32>
    %c0_25 = arith.constant 0 : index
    %c0_26 = arith.constant 0 : index
    %60 = vector.load %arg4[%c0_25, %c0_26] : memref<128x128xf32, #tpu.memory_space<vmem>>, vector<128x128xf32>
    %cst_27 = arith.constant dense<0.000000e+00> : vector<64x128xf32>
    %61 = tpu.matmul %59, %60, %cst_27 {dimension_numbers = #tpu.dot_dimension_numbers<[1], [0], [0], [1], [0, 0, 1, 1], [], []>} : vector<64x128xf32>, vector<128x128xf32>, vector<64x128xf32> -> vector<64x128xf32>
    %c0_28 = arith.constant 0 : index
    %c1664 = arith.constant 1664 : index
    %62 = vector.load %arg2[%c0_28, %c1664] : memref<1x1920xf32, #tpu.memory_space<vmem>>, vector<1x128xf32>
    %63 = vector.broadcast %62 : vector<1x128xf32> to vector<64x128xf32>
    %64 = arith.addf %61, %63 : vector<64x128xf32>
    %c1 = arith.constant 1 : index
    %65 = memref.load %arg0[%c1] : memref<3xf32, #tpu.memory_space<smem>>
    %cst_29 = arith.constant 0.000000e+00 : f32
    %66 = vector.broadcast %cst_29 : f32 to vector<64x128xf32>
    %67 = arith.cmpf oge, %64, %66 : vector<64x128xf32>
    %68 = vector.broadcast %65 : f32 to vector<64x128xf32>
    %69 = arith.mulf %68, %64 : vector<64x128xf32>
    %70 = arith.select %67, %64, %69 : vector<64x128xi1>, vector<64x128xf32>
    %cst_30 = arith.constant 1.000000e+00 : f32
    %71 = vector.broadcast %cst_30 : f32 to vector<1x64xf32>
    %cst_31 = arith.constant dense<0.000000e+00> : vector<1x128xf32>
    %72 = tpu.matmul %71, %70, %cst_31 {dimension_numbers = #tpu.dot_dimension_numbers<[1], [0], [0], [1], [0, 0, 1, 1], [], []>} : vector<1x64xf32>, vector<64x128xf32>, vector<1x128xf32> -> vector<1x128xf32>
    %73 = arith.mulf %70, %70 : vector<64x128xf32>
    %cst_32 = arith.constant dense<0.000000e+00> : vector<1x128xf32>
    %74 = tpu.matmul %71, %73, %cst_32 {dimension_numbers = #tpu.dot_dimension_numbers<[1], [0], [0], [1], [0, 0, 1, 1], [], []>} : vector<1x64xf32>, vector<64x128xf32>, vector<1x128xf32> -> vector<1x128xf32>
    %c0_33 = arith.constant 0 : index
    %c1280 = arith.constant 1280 : index
    %75 = vector.load %arg2[%c0_33, %c1280] : memref<1x1920xf32, #tpu.memory_space<vmem>>, vector<1x128xf32>
    %c0_34 = arith.constant 0 : index
    %c1408 = arith.constant 1408 : index
    %76 = vector.load %arg2[%c0_34, %c1408] : memref<1x1920xf32, #tpu.memory_space<vmem>>, vector<1x128xf32>
    %cst_35 = arith.constant 1.562500e-02 : f32
    %77 = vector.broadcast %cst_35 : f32 to vector<1x128xf32>
    %78 = arith.mulf %72, %77 : vector<1x128xf32>
    %cst_36 = arith.constant 1.562500e-02 : f32
    %79 = vector.broadcast %cst_36 : f32 to vector<1x128xf32>
    %80 = arith.mulf %74, %79 : vector<1x128xf32>
    %81 = arith.mulf %78, %78 : vector<1x128xf32>
    %82 = arith.subf %80, %81 : vector<1x128xf32>
    %cst_37 = arith.constant 0.000000e+00 : f32
    %83 = vector.broadcast %cst_37 : f32 to vector<1x128xf32>
    %84 = arith.maximumf %82, %83 : vector<1x128xf32>
    %cst_38 = arith.constant 9.99999974E-6 : f32
    %85 = vector.broadcast %cst_38 : f32 to vector<1x128xf32>
    %86 = arith.addf %84, %85 : vector<1x128xf32>
    %87 = math.rsqrt %86 : vector<1x128xf32>
    %88 = arith.mulf %75, %87 : vector<1x128xf32>
    %89 = arith.mulf %78, %88 : vector<1x128xf32>
    %90 = arith.subf %76, %89 : vector<1x128xf32>
    %91 = vector.broadcast %88 : vector<1x128xf32> to vector<64x128xf32>
    %92 = arith.mulf %70, %91 : vector<64x128xf32>
    %93 = vector.broadcast %90 : vector<1x128xf32> to vector<64x128xf32>
    %94 = arith.addf %92, %93 : vector<64x128xf32>
    %c0_39 = arith.constant 0 : index
    %c0_40 = arith.constant 0 : index
    %95 = vector.load %arg5[%c0_39, %c0_40] : memref<128x128xf32, #tpu.memory_space<vmem>>, vector<128x128xf32>
    %cst_41 = arith.constant dense<0.000000e+00> : vector<64x128xf32>
    %96 = tpu.matmul %94, %95, %cst_41 {dimension_numbers = #tpu.dot_dimension_numbers<[1], [0], [0], [1], [0, 0, 1, 1], [], []>} : vector<64x128xf32>, vector<128x128xf32>, vector<64x128xf32> -> vector<64x128xf32>
    %c0_42 = arith.constant 0 : index
    %c1792 = arith.constant 1792 : index
    %97 = vector.load %arg2[%c0_42, %c1792] : memref<1x1920xf32, #tpu.memory_space<vmem>>, vector<1x128xf32>
    %98 = vector.broadcast %97 : vector<1x128xf32> to vector<64x128xf32>
    %99 = arith.addf %96, %98 : vector<64x128xf32>
    %c2 = arith.constant 2 : index
    %100 = memref.load %arg0[%c2] : memref<3xf32, #tpu.memory_space<smem>>
    %cst_43 = arith.constant 0.000000e+00 : f32
    %101 = vector.broadcast %cst_43 : f32 to vector<64x128xf32>
    %102 = arith.cmpf oge, %99, %101 : vector<64x128xf32>
    %103 = vector.broadcast %100 : f32 to vector<64x128xf32>
    %104 = arith.mulf %103, %99 : vector<64x128xf32>
    %105 = arith.select %102, %99, %104 : vector<64x128xi1>, vector<64x128xf32>
    %106 = tpu.iota {dimensions = array<i32: 1>} : vector<64x128xi32>
    %c2_i32 = arith.constant 2 : i32
    %107 = vector.broadcast %c2_i32 : i32 to vector<64x128xi32>
    %108 = arith.cmpi slt, %106, %107 : vector<64x128xi32>
    %cst_44 = arith.constant 0xFF800000 : f32
    %109 = vector.broadcast %cst_44 : f32 to vector<64x128xf32>
    %110 = arith.select %108, %105, %109 : vector<64x128xi1>, vector<64x128xf32>
    %cst_45 = arith.constant dense<0xFF800000> : vector<64xf32>
    %111 = vector.multi_reduction <maximumf>, %110, %cst_45 [1] : vector<64x128xf32> to vector<64xf32>
    %112 = vector.shape_cast %111 : vector<64xf32> to vector<64x1xf32>
    %113 = vector.broadcast %112 : vector<64x1xf32> to vector<64x128xf32>
    %114 = arith.subf %110, %113 : vector<64x128xf32>
    %115 = math.exp %114 : vector<64x128xf32>
    %cst_46 = arith.constant dense<0.000000e+00> : vector<64xf32>
    %116 = vector.multi_reduction <add>, %115, %cst_46 [1] : vector<64x128xf32> to vector<64xf32>
    %117 = vector.shape_cast %116 : vector<64xf32> to vector<64x1xf32>
    %118 = tpu.reciprocal %117 {approx = true} : vector<64x1xf32> -> vector<64x1xf32>
    %119 = vector.broadcast %118 : vector<64x1xf32> to vector<64x128xf32>
    %120 = arith.mulf %115, %119 : vector<64x128xf32>
    %c0_47 = arith.constant 0 : index
    %c0_48 = arith.constant 0 : index
    %121 = vector.load %arg6[%c0_47, %c0_48] : memref<64x128xf32, #tpu.memory_space<vmem>>, vector<64x128xf32>
    tpu.vector_store %arg6[%c0_47, %c0_48], %120 {strides = array<i32>} : memref<64x128xf32, #tpu.memory_space<vmem>>, vector<64x128xf32>,
    return
  }
}

</mosaic_0001>

<bundles_post_ra>
// kernel: tpu_custom_call.1
= control target key start
LH: loop header
LB: loop body
LE: loop exit
PB: predicated region body
PF: predicated region fallthrough
CT: control target
= control target key end

     0   :  { %11 = vsyncpa [#allocation5], 0  ;;  %s3111_s0 = inlined_call_operand.hbm [shape: f32[3], index: 0, kind: input, shape index: {}]   ;;  %s3112_s1 = inlined_call_operand.hbm [shape: f32[64,512], index: 1, kind: input, shape index: {}]   ;;  %s3113_s2 = inlined_call_operand.hbm [shape: f32[1,1920], index: 2, kind: input, shape index: {}]   ;;  %s3114_s3 = inlined_call_operand.hbm [shape: f32[512,128], index: 3, kind: input, shape index: {}]   ;;  %s3115_s4 = inlined_call_operand.hbm [shape: f32[128,128], index: 4, kind: input, shape index: {}]   ;;  %s3116_s5 = inlined_call_operand.hbm [shape: f32[128,128], index: 5, kind: input, shape index: {}]   ;;  %s3117_s6 = inlined_call_operand.hbm [shape: f32[64,128], index: 6, kind: output, shape index: {}]  }
   0x1   :  { %12 = vsyncpa [#allocation3], 0 }
   0x2   :  { %13 = vsyncpa [#allocation8], 0 }
   0x3   :  { %14 = vsyncpa [#allocation11], 0 }
   0x4   :  { %15 = vsyncpa [#allocation4], 0  ;;  %s2580_s21 = smov [#allocation7]   ;;  %s2428_s25 = scalar_lea.hbm %s3113_s2, 240 }
   0x5   :  { %s42_s22 = sshll.u32 %s2580_s21, 4  ;;  %p2429_p0 = scmp.ne.s32.totalorder %s3113_s2, %s2428_s25  ;;  %s43_s22 = int_to_ptr.vmem [resolvable:$true] %s42_s22 }
   0x6   :  { %p2432_p1 = scmp.lt.u32.totalorder %s2428_s25, %s3113_s2 }
   0x8   :  { %p2434_p2 = pnand %p2432_p1, %p2429_p0 }
   0xa   :  { %2437 = shalt.err (!%p2434_p2)
}
   0xb   :  { %s2438_s30 = scalar_lea.vmem %s43_s22, 240  ;;  %s2442_s7 = scalar_lea.vmem %s43_s22, 256 }
   0xc   :  { %p2439_p3 = scmp.ne.s32.totalorder %s43_s22, %s2438_s30  ;;  %p2443_p4 = scmp.lt.s32.totalorder %s43_s22, %s43_s22 }
   0xd   :  { %p2444_p5 = scmp.lt.s32.totalorder %s2442_s7, %s2438_s30 }
   0xf   :  { %p2445_p6 = por %p2444_p5, %p2443_p4 }
  0x11   :  { %p2446_p7 = pnand %p2445_p6, %p2439_p3 }
  0x13   :  { %2449 = shalt.err (!%p2446_p7)
}
  0x14   :  { %45 = dma.hbm_to_vmem [thread:$0]  %s3113_s2, 240, %s43_s22, [#allocation8]  }
  0x15   :  { %s2581_s10 = smov [#allocation10]   ;;  %s2450_s14 = scalar_lea.hbm %s3115_s4, 2048 }
  0x16   :  { %s63_s11 = sshll.u32 %s2581_s10, 4  ;;  %p2451_p8 = scmp.ne.s32.totalorder %s3115_s4, %s2450_s14  ;;  %s64_s11 = int_to_ptr.vmem [resolvable:$true] %s63_s11 }
  0x17   :  { %p2454_p9 = scmp.lt.u32.totalorder %s2450_s14, %s3115_s4 }
  0x19   :  { %p2456_p10 = pnand %p2454_p9, %p2451_p8 }
  0x1b   :  { %2459 = shalt.err (!%p2456_p10)
}
  0x1c   :  { %s2460_s19 = scalar_lea.vmem %s64_s11, 2048  ;;  %p2465_p12 = scmp.lt.s32.totalorder %s64_s11, %s64_s11 }
  0x1d   :  { %p2461_p11 = scmp.ne.s32.totalorder %s64_s11, %s2460_s19  ;;  %p2466_p13 = scmp.lt.s32.totalorder %s2460_s19, %s2460_s19 }
  0x1f   :  { %p2467_p0 = por %p2466_p13, %p2465_p12 }
  0x21   :  { %p2468_p1 = pnand %p2467_p0, %p2461_p11 }
  0x23   :  { %2471 = shalt.err (!%p2468_p1)
}
  0x24   :  { %s2582_s2 = smov 128   ;;  %s2583_s20 = smov 8  }
  0x25   :  { %69 = dma.hbm_to_vmem [thread:$0]  %s3115_s4, 2048, %s64_s11, [#allocation11], %s2582_s2, %s2582_s2, %s2583_s20  }
  0x26   :  { %s2472_s25 = scalar_lea.hbm %s3111_s0, 16 }
  0x27   :  { %p2473_p2 = scmp.ne.s32.totalorder %s3111_s0, %s2472_s25  ;;  %p2476_p3 = scmp.lt.u32.totalorder %s2472_s25, %s3111_s0 }
  0x29   :  { %p2478_p4 = pnand %p2476_p3, %p2473_p2 }
  0x2b   :  { %2481 = shalt.err (!%p2478_p4)
}
  0x2c   :  { %s2584_s30 = smov [#allocation2]   ;;  %s2585_s4 = smov [#allocation6]  }
  0x2d   :  { %23 = dma.hbm_to_smem %s3111_s0, 16, %s2584_s30, [#allocation5]  }
  0x2e   :  { %s29_s9 = sshll.u32 %s2585_s4, 4  ;;  %s2482_s12 = scalar_lea.hbm %s3112_s1, 4096  ;;  %s30_s9 = int_to_ptr.vmem [resolvable:$true] %s29_s9 }
  0x2f   :  { %p2483_p5 = scmp.ne.s32.totalorder %s3112_s1, %s2482_s12  ;;  %p2486_p6 = scmp.lt.u32.totalorder %s2482_s12, %s3112_s1 }
  0x31   :  { %p2488_p7 = pnand %p2486_p6, %p2483_p5 }
  0x33   :  { %2491 = shalt.err (!%p2488_p7)
}
  0x34   :  { %s2492_s17 = scalar_lea.vmem %s30_s9, 4096  ;;  %p2497_p9 = scmp.lt.s32.totalorder %s30_s9, %s30_s9 }
  0x35   :  { %p2493_p8 = scmp.ne.s32.totalorder %s30_s9, %s2492_s17  ;;  %p2498_p10 = scmp.lt.s32.totalorder %s2492_s17, %s2492_s17 }
  0x37   :  { %p2499_p11 = por %p2498_p10, %p2497_p9 }
  0x39   :  { %p2500_p12 = pnand %p2499_p11, %p2493_p8 }
  0x3b   :  { %2503 = shalt.err (!%p2500_p12)
}
  0x3c   :  { %s2586_s0 = smov 512   ;;  %s2587_s18 = smov 32  }
  0x3d   :  { %35 = dma.hbm_to_vmem [thread:$0]  %s3112_s1, 4096, %s30_s9, [#allocation3], %s2586_s0, %s2586_s0, %s2587_s18  }
  0x3e   :  { %s2588_s22 = smov [#allocation9]   ;;  %s2589_s24 = smov [#allocation12]  }
  0x3f   :  { %s51_s23 = sshll.u32 %s2588_s22, 4  ;;  %s75_s25 = sshll.u32 %s2589_s24, 4  ;;  %s52_s23 = int_to_ptr.vmem [resolvable:$true] %s51_s23  ;;  %s2682_s25 = int_to_ptr.vmem [resolvable:$true] %s75_s25 }
  0x40   :  { %s2504_s28 = scalar_lea.hbm %s3114_s3, 8192 }
  0x41   :  { %p2505_p13 = scmp.ne.s32.totalorder %s3114_s3, %s2504_s28  ;;  %p2508_p0 = scmp.lt.u32.totalorder %s2504_s28, %s3114_s3 }
  0x43   :  { %p2510_p1 = pnand %p2508_p0, %p2505_p13 }
  0x45   :  { %2513 = shalt.err (!%p2510_p1)
}
  0x46   :  { %s2514_s1 = scalar_lea.vmem %s52_s23, 8192  ;;  %p2519_p3 = scmp.lt.s32.totalorder %s52_s23, %s52_s23 }
  0x47   :  { %p2515_p2 = scmp.ne.s32.totalorder %s52_s23, %s2514_s1  ;;  %p2520_p4 = scmp.lt.s32.totalorder %s2514_s1, %s2514_s1 }
  0x49   :  { %p2521_p5 = por %p2520_p4, %p2519_p3 }
  0x4b   :  { %p2522_p6 = pnand %p2521_p5, %p2515_p2 }
  0x4d   :  { %2525 = shalt.err (!%p2522_p6)
}
  0x4e   :  { %57 = dma.hbm_to_vmem [thread:$0]  %s3114_s3, 8192, %s52_s23, [#allocation8], %s2582_s2, %s2582_s2, %s2583_s20  }
  0x4f   :  { %s2526_s12 = scalar_lea.hbm %s3116_s5, 2048 }
  0x50   :  { %p2527_p7 = scmp.ne.s32.totalorder %s3116_s5, %s2526_s12  ;;  %p2530_p8 = scmp.lt.u32.totalorder %s2526_s12, %s3116_s5 }
  0x52   :  { %p2532_p9 = pnand %p2530_p8, %p2527_p7 }
  0x54   :  { %2535 = shalt.err (!%p2532_p9)
}
  0x55   :  { %s2536_s17 = scalar_lea.vmem %s2682_s25, 2048  ;;  %p2541_p11 = scmp.lt.s32.totalorder %s2682_s25, %s2682_s25 }
  0x56   :  { %p2537_p10 = scmp.ne.s32.totalorder %s2682_s25, %s2536_s17  ;;  %p2542_p12 = scmp.lt.s32.totalorder %s2536_s17, %s2536_s17 }
  0x58   :  { %p2543_p13 = por %p2542_p12, %p2541_p11 }
  0x5a   :  { %p2544_p0 = pnand %p2543_p13, %p2537_p10 }
  0x5c   :  { %2547 = shalt.err (!%p2544_p0)
}
  0x5d   :  { %81 = dma.hbm_to_vmem [thread:$0]  %s3116_s5, 2048, %s2682_s25, [#allocation11], %s2582_s2, %s2582_s2, %s2583_s20  }
  0x5e   :  { %2570 = dma.done.wait [#allocation5], 16  }
  0x5f   :  { %2571 = vsyncadd [#allocation5], 4294967280 }
  0x60   :  { %2572 = dma.done.wait [#allocation3], 4096  }
  0x61   :  { %2573 = vsyncadd [#allocation3], 4294963200 }
  0x62   :  { %2574 = dma.done.wait [#allocation8], 8432  }
  0x63   :  { %2575 = vsyncadd [#allocation8], 4294958864 }
  0x64   :  { %2576 = dma.done.wait [#allocation11], 4096  }
  0x65   :  { %2577 = vsyncadd [#allocation11], 4294963200 }
  0x66   :  { %100 = sfence }
  0x67   :  { %v2719_v0 = vld [vmem:[#allocation6 + $0x8] sm:$0xff]  ;;  %v2723_v2 = vld [vmem:[#allocation6 + $0x18] sm:$0xff]  ;;  %v2729_v5 = vld [vmem:[#allocation6] sm:$0xff]  ;;  %v2590_v7 = vmov 0.0   ;;  %vm133_vm0 = vcmask 523264   ;;  %vm2594_vm1 = vmmov 0  }
  0x68   :  { %v2721_v1 = vld [vmem:[#allocation6 + $0x28] sm:$0xff]  ;;  %v2727_v4 = vld [vmem:[#allocation6 + $0x38] sm:$0xff]  ;;  %v2731_v6 = vld [vmem:[#allocation6 + $0x20] sm:$0xff]  ;;  %201 = vmatprep.mubr.f32.mxu0 %v2590_v7  ;;  %272 = vmatprep.mubr.f32.mxu1 %v2590_v7  ;;  %v280_v35 = vmul.f32 %v2719_v0, %v2719_v0  ;;  %v282_v46 = vmul.f32 %v2723_v2, %v2723_v2  ;;  %v279_v51 = vmul.f32 %v2729_v5, %v2729_v5  ;;  %s934_s5 = sld [smem:[#allocation2]]  ;;  %s1763_s18 = sld [smem:[#allocation2 + $0x1]] }
  0x69   :  { %v2128_v3 = vpack.c.bf16 %v2721_v1, %v2719_v0  ;;  %v2144_v8 = vpack.c.bf16 %v2727_v4, %v2723_v2  ;;  %v2130_v9 = vpack.c.bf16 %v2731_v6, %v2729_v5  ;;  %v2738_v10 = vld [vmem:[#allocation6 + $0x10] sm:$0xff]  ;;  %v2742_v12 = vld [vmem:[#allocation6 + $0x48] sm:$0xff]  ;;  %v2749_v15 = vld [vmem:[#allocation6 + $0x58] sm:$0xff]  ;;  %v284_v36 = vmul.f32 %v2721_v1, %v2721_v1  ;;  %s1767_s19 = sld [smem:[#allocation2 + $0x2]]  ;;  %s2595_s21 = smov [#allocation13]  }
  0x6a   :  { %v2740_v11 = vld [vmem:[#allocation6 + $0x30] sm:$0xff]  ;;  %v2747_v14 = vld [vmem:[#allocation6 + $0x68] sm:$0xff]  ;;  %v2751_v16 = vld [vmem:[#allocation6 + $0x78] sm:$0xff]  ;;  %v286_v47 = vmul.f32 %v2727_v4, %v2727_v4  ;;  %v283_v52 = vmul.f32 %v2731_v6, %v2731_v6  ;;  %v281_v53 = vmul.f32 %v2738_v10, %v2738_v10  ;;  %v288_v58 = vmul.f32 %v2742_v12, %v2742_v12  ;;  %s1740_s22 = sshll.u32 %s2595_s21, 4  ;;  %s1741_s22 = int_to_ptr.vmem [resolvable:$true] %s1740_s22 }
  0x6b   :  { %2129 = vmatprep.subr.bf16.mxu0 %v2128_v3  ;;  %v2146_v13 = vpack.c.bf16 %v2740_v11, %v2738_v10  ;;  %2145 = vmatprep.subr.bf16.mxu1 %v2144_v8  ;;  %v2132_v17 = vpack.c.bf16 %v2747_v14, %v2742_v12  ;;  %v2148_v18 = vpack.c.bf16 %v2751_v16, %v2749_v15  ;;  %v2757_v19 = vld [vmem:[#allocation6 + $0x40] sm:$0xff]  ;;  %v2761_v21 = vld [vmem:[#allocation6 + $0x50] sm:$0xff]  ;;  %v2767_v24 = vld [vmem:[#allocation6 + $0x88] sm:$0xff]  ;;  %s2548_s23 = scalar_lea.vmem %s1741_s22, 1024  ;;  %p2553_p2 = scmp.lt.s32.totalorder %s1741_s22, %s1741_s22 }
  0x6c   :  { %2131 = vmatpush1.bf16.msra.mxu0 %v2130_v9  ;;  %v2759_v20 = vld [vmem:[#allocation6 + $0x60] sm:$0xff]  ;;  %v2765_v23 = vld [vmem:[#allocation6 + $0x70] sm:$0xff]  ;;  %v2769_v25 = vld [vmem:[#allocation6 + $0xa8] sm:$0xff]  ;;  %v285_v54 = vmul.f32 %v2740_v11, %v2740_v11  ;;  %v2160_v56 = vpack.c.bf16 %v284_v36, %v280_v35  ;;  %v292_v59 = vmul.f32 %v2747_v14, %v2747_v14  ;;  %v2176_v60 = vpack.c.bf16 %v286_v47, %v282_v46  ;;  %p2549_p1 = scmp.ne.s32.totalorder %s1741_s22, %s2548_s23  ;;  %p2554_p3 = scmp.lt.s32.totalorder %s2548_s23, %s2548_s23 }
  0x6d   :  { %2147 = vmatpush1.bf16.msra.mxu1 %v2146_v13  ;;  %v2134_v22 = vpack.c.bf16 %v2759_v20, %v2757_v19  ;;  %2133 = vmatprep.subr.bf16.mxu0 %v2132_v17  ;;  %v2150_v26 = vpack.c.bf16 %v2765_v23, %v2761_v21  ;;  %v2136_v27 = vpack.c.bf16 %v2769_v25, %v2767_v24  ;;  %v2775_v28 = vld [vmem:[#allocation6 + $0x98] sm:$0xff]  ;;  %v2779_v30 = vld [vmem:[#allocation6 + $0x80] sm:$0xff]  ;;  %v2785_v33 = vld [vmem:[#allocation6 + $0x90] sm:$0xff] }
  0x6e   :  { %2149 = vmatprep.subr.bf16.mxu1 %v2148_v18  ;;  %v2777_v29 = vld [vmem:[#allocation6 + $0xb8] sm:$0xff]  ;;  %v2783_v32 = vld [vmem:[#allocation6 + $0xa0] sm:$0xff]  ;;  %v2787_v34 = vld [vmem:[#allocation6 + $0xb0] sm:$0xff]  ;;  %v290_v61 = vmul.f32 %v2749_v15, %v2749_v15  ;;  %v294_v62 = vmul.f32 %v2751_v16, %v2751_v16  ;;  %v287_v63 = vmul.f32 %v2757_v19, %v2757_v19  ;;  %v291_v3 = vmul.f32 %v2759_v20, %v2759_v20  ;;  %p2555_p4 = por %p2554_p3, %p2553_p2 }
  0x6f   :  { %v2152_v31 = vpack.c.bf16 %v2777_v29, %v2775_v28  ;;  %v2138_v37 = vpack.c.bf16 %v2783_v32, %v2779_v30  ;;  %v2795_v38 = vld [vmem:[#allocation6 + $0xc8] sm:$0xff]  ;;  %v2799_v40 = vld [vmem:[#allocation6 + $0xd8] sm:$0xff]  ;;  %v2154_v41 = vpack.c.bf16 %v2787_v34, %v2785_v33  ;;  %v2807_v44 = vld [vmem:[#allocation6 + $0xc0] sm:$0xff]  ;;  %v289_v8 = vmul.f32 %v2761_v21, %v2761_v21 }
  0x70   :  { %2135 = vmatpush1.bf16.msra.mxu0 %v2134_v22  ;;  %v2797_v39 = vld [vmem:[#allocation6 + $0xe8] sm:$0xff]  ;;  %v2805_v43 = vld [vmem:[#allocation6 + $0xf8] sm:$0xff]  ;;  %v2809_v45 = vld [vmem:[#allocation6 + $0xe0] sm:$0xff]  ;;  %v293_v9 = vmul.f32 %v2765_v23, %v2765_v23  ;;  %v2162_v13 = vpack.c.bf16 %v283_v52, %v279_v51  ;;  %v2178_v17 = vpack.c.bf16 %v285_v54, %v281_v53  ;;  %v2164_v18 = vpack.c.bf16 %v292_v59, %v288_v58  ;;  %p2556_p5 = pnand %p2555_p4, %p2549_p1 }
  0x71   :  { %2151 = vmatpush1.bf16.msra.mxu1 %v2150_v26  ;;  %2137 = vmatprep.subr.bf16.mxu0 %v2136_v27  ;;  %v2140_v42 = vpack.c.bf16 %v2797_v39, %v2795_v38  ;;  %v2156_v48 = vpack.c.bf16 %v2805_v43, %v2799_v40  ;;  %v2817_v49 = vld [vmem:[#allocation6 + $0xd0] sm:$0xff]  ;;  %v2142_v55 = vpack.c.bf16 %v2809_v45, %v2807_v44 }
  0x72   :  { %2153 = vmatprep.subr.bf16.mxu1 %v2152_v31  ;;  %v2819_v50 = vld [vmem:[#allocation6 + $0xf0] sm:$0xff]  ;;  %v296_v22 = vmul.f32 %v2767_v24, %v2767_v24  ;;  %v300_v26 = vmul.f32 %v2769_v25, %v2769_v25  ;;  %v2180_v27 = vpack.c.bf16 %v294_v62, %v290_v61  ;;  %v298_v31 = vmul.f32 %v2775_v28, %v2775_v28 }
  0x73   :  { %v2158_v57 = vpack.c.bf16 %v2819_v50, %v2817_v49  ;;  %v302_v35 = vmul.f32 %v2777_v29, %v2777_v29  ;;  %v295_v36 = vmul.f32 %v2779_v30, %v2779_v30  ;;  %v301_v46 = vmul.f32 %v2787_v34, %v2787_v34 }
  0x74   :  { %2139 = vmatpush1.bf16.msra.mxu0 %v2138_v37  ;;  %v299_v37 = vmul.f32 %v2783_v32, %v2783_v32  ;;  %v2166_v47 = vpack.c.bf16 %v291_v3, %v287_v63  ;;  %v2168_v51 = vpack.c.bf16 %v300_v26, %v296_v22  ;;  %v304_v52 = vmul.f32 %v2795_v38, %v2795_v38  ;;  %v702_v26 = vld [vmem:[#allocation9 + $0x188] sm:$0xff] }
  0x75   :  { %2155 = vmatpush1.bf16.msra.mxu1 %v2154_v41  ;;  %2141 = vmatprep.subr.bf16.mxu0 %v2140_v42  ;;  %v297_v41 = vmul.f32 %v2785_v33, %v2785_v33  ;;  %v2591_v42 = vmov 1.0   ;;  %v308_v53 = vmul.f32 %v2797_v39, %v2797_v39  ;;  %v2184_v54 = vpack.c.bf16 %v302_v35, %v298_v31  ;;  %v654_v31 = vld [vmem:[#allocation9 + $0x8] sm:$0xff] }
  0x76   :  { %2157 = vmatprep.subr.bf16.mxu1 %v2156_v48  ;;  %v2182_v48 = vpack.c.bf16 %v293_v9, %v289_v8  ;;  %v307_v58 = vmul.f32 %v2809_v45, %v2809_v45  ;;  %v305_v59 = vmul.f32 %v2817_v49, %v2817_v49  ;;  %v309_v61 = vmul.f32 %v2819_v50, %v2819_v50 }
  0x77   :  { %v2186_v62 = vpack.c.bf16 %v301_v46, %v297_v41  ;;  %v2172_v63 = vpack.c.bf16 %v308_v53, %v304_v52  ;;  %v686_v41 = vld [vmem:[#allocation9 + $0x108] sm:$0xff]  ;;  %v704_v53 = vld [vmem:[#allocation9 + $0x198] sm:$0xff] }
  0x78   :  { %2143 = vmatpush1.bf16.msra.mxu0 %v2142_v55  ;;  %v306_v55 = vmul.f32 %v2799_v40, %v2799_v40  ;;  %v2190_v9 = vpack.c.bf16 %v309_v61, %v305_v59  ;;  %v688_v59 = vld [vmem:[#allocation9 + $0x118] sm:$0xff]  ;;  %v673_v61 = vld [vmem:[#allocation9 + $0xa0] sm:$0xff] }
  0x79   :  { %2159 = vmatpush1.bf16.msra.mxu1 %v2158_v57  ;;  %2161 = vmatprep.subr.bf16.mxu0 %v2160_v56  ;;  %v310_v56 = vmul.f32 %v2805_v43, %v2805_v43  ;;  %v303_v57 = vmul.f32 %v2807_v44, %v2807_v44 }
  0x7a   :  { %2177 = vmatprep.subr.bf16.mxu1 %v2176_v60  ;;  %v2170_v60 = vpack.c.bf16 %v299_v37, %v295_v36  ;;  %v685_v37 = vld [vmem:[#allocation9 + $0x100] sm:$0xff] }
  0x7b   :  { %1755 = vmatmul.mubr.msk.f32.vlgmr.msra.gmra.mrb[0].mxu0 %vm133_vm0, %v2591_v42  ;;  %v2188_v3 = vpack.c.bf16 %v310_v56, %v306_v55  ;;  %v2174_v8 = vpack.c.bf16 %v307_v58, %v303_v57  ;;  %v2226_v46 = vpack.c.bf16 %v686_v41, %v685_v37  ;;  %v656_v55 = vld [vmem:[#allocation9 + $0x18] sm:$0xff]  ;;  %v687_v58 = vld [vmem:[#allocation9 + $0x110] sm:$0xff] }
  0x7c   :  { %1756 = vmatmul.mubr.msk.f32.vlgmr.msra.gmra.mrb[0].mxu1 %vm133_vm0, %v2591_v42  ;;  %2163 = vmatpush1.bf16.msra.mxu0 %v2162_v13  ;;  %v669_v13 = vld [vmem:[#allocation9 + $0x80] sm:$0xff]  ;;  %v708_v41 = vld [vmem:[#allocation9 + $0x1b8] sm:$0xff] }
  0x7d   :  { %2179 = vmatpush1.bf16.msra.mxu1 %v2178_v17  ;;  %2165 = vmatprep.subr.bf16.mxu0 %v2164_v18  ;;  %v670_v17 = vld [vmem:[#allocation9 + $0x88] sm:$0xff]  ;;  %v701_v18 = vld [vmem:[#allocation9 + $0x180] sm:$0xff] }
  0x7e   :  { %2181 = vmatprep.subr.bf16.mxu1 %v2180_v27  ;;  %375 = vmatprep.mubr.f32.mxu0 %v2590_v7  ;;  %v2192_v22 = vpack.c.bf16 %v670_v17, %v669_v13  ;;  %v653_v27 = vld [vmem:[#allocation9] sm:$0xff]  ;;  %v2224_v35 = vpack.c.bf16 %v702_v26, %v701_v18  ;;  %v658_v13 = vld [vmem:[#allocation9 + $0x28] sm:$0xff] }
  0x7f   :  { %446 = vmatprep.mubr.f32.mxu1 %v2590_v7  ;;  %v2194_v36 = vpack.c.bf16 %v654_v31, %v653_v27  ;;  %v690_v26 = vld [vmem:[#allocation9 + $0x128] sm:$0xff]  ;;  %v675_v31 = vld [vmem:[#allocation9 + $0xb0] sm:$0xff] }
  0x80   :  { %2167 = vmatpush1.bf16.msra.mxu0 %v2166_v47  ;;  %v671_v47 = vld [vmem:[#allocation9 + $0x90] sm:$0xff] }
  0x81   :  { %2183 = vmatpush1.bf16.msra.mxu1 %v2182_v48  ;;  %2169 = vmatprep.subr.bf16.mxu0 %v2168_v51  ;;  %v672_v48 = vld [vmem:[#allocation9 + $0x98] sm:$0xff]  ;;  %v703_v51 = vld [vmem:[#allocation9 + $0x190] sm:$0xff] }
  0x82   :  { %2185 = vmatprep.subr.bf16.mxu1 %v2184_v54  ;;  %v2196_v52 = vpack.c.bf16 %v672_v48, %v671_v47  ;;  %v655_v54 = vld [vmem:[#allocation9 + $0x10] sm:$0xff]  ;;  %v2228_v56 = vpack.c.bf16 %v704_v53, %v703_v51  ;;  %v660_v47 = vld [vmem:[#allocation9 + $0x38] sm:$0xff] }
  0x83   :  { %v2198_v57 = vpack.c.bf16 %v656_v55, %v655_v54  ;;  %v691_v48 = vld [vmem:[#allocation9 + $0x130] sm:$0xff]  ;;  %v692_v51 = vld [vmem:[#allocation9 + $0x138] sm:$0xff]  ;;  %v677_v55 = vld [vmem:[#allocation9 + $0xc0] sm:$0xff] }
  0x84   :  { %2171 = vmatpush1.bf16.msra.mxu0 %v2170_v60  ;;  %v2230_v60 = vpack.c.bf16 %v688_v59, %v687_v58  ;;  %v2238_v54 = vpack.c.bf16 %v692_v51, %v691_v48  ;;  %v710_v59 = vld [vmem:[#allocation9 + $0x1c8] sm:$0xff]  ;;  %v713_v51 = vld [vmem:[#allocation9 + $0x1e0] sm:$0xff] }
  0x85   :  { %2187 = vmatpush1.bf16.msra.mxu1 %v2186_v62  ;;  %2173 = vmatprep.subr.bf16.mxu0 %v2172_v63  ;;  %v674_v62 = vld [vmem:[#allocation9 + $0xa8] sm:$0xff]  ;;  %v705_v63 = vld [vmem:[#allocation9 + $0x1a0] sm:$0xff] }
  0x86   :  { %2189 = vmatprep.subr.bf16.mxu1 %v2188_v3  ;;  %v2200_v3 = vpack.c.bf16 %v674_v62, %v673_v61  ;;  %v662_v61 = vld [vmem:[#allocation9 + $0x48] sm:$0xff] }
  0x87   :  { %v682_v48 = vld [vmem:[#allocation9 + $0xe8] sm:$0xff] }
  0x88   :  { %2175 = vmatpush1.bf16.msra.mxu0 %v2174_v8  ;;  %v706_v8 = vld [vmem:[#allocation9 + $0x1a8] sm:$0xff] }
  0x89   :  { %2191 = vmatpush1.bf16.msra.mxu1 %v2190_v9  ;;  %2193 = vmatprep.subr.bf16.mxu0 %v2192_v22  ;;  %v657_v9 = vld [vmem:[#allocation9 + $0x20] sm:$0xff]  ;;  %v2232_v17 = vpack.c.bf16 %v706_v8, %v705_v63  ;;  %v694_v8 = vld [vmem:[#allocation9 + $0x148] sm:$0xff] }
  0x8a   :  { %2225 = vmatprep.subr.bf16.mxu1 %v2224_v35  ;;  %v2202_v18 = vpack.c.bf16 %v658_v13, %v657_v9  ;;  %v689_v22 = vld [vmem:[#allocation9 + $0x120] sm:$0xff]  ;;  %v676_v35 = vld [vmem:[#allocation9 + $0xb8] sm:$0xff]  ;;  %v679_v13 = vld [vmem:[#allocation9 + $0xd0] sm:$0xff] }
  0x8b   :  { %1757 = vmatmul.mubr.msk.f32.vlgmr.msra.gmra.mrb[2].mxu0 %vm133_vm0, %v2591_v42  ;;  %v2234_v27 = vpack.c.bf16 %v690_v26, %v689_v22  ;;  %v2204_v37 = vpack.c.bf16 %v676_v35, %v675_v31  ;;  %v712_v26 = vld [vmem:[#allocation9 + $0x1d8] sm:$0xff] }
  0x8c   :  { %1758 = vmatmul.mubr.msk.f32.vlgmr.msra.gmra.mrb[2].mxu1 %vm133_vm0, %v2591_v42  ;;  %2195 = vmatpush3.bf16.msra.mxu0 %v2194_v36  ;;  %v707_v36 = vld [vmem:[#allocation9 + $0x1b0] sm:$0xff]  ;;  %v664_v31 = vld [vmem:[#allocation9 + $0x58] sm:$0xff] }
  0x8d   :  { %2227 = vmatpush3.bf16.msra.mxu1 %v2226_v46  ;;  %2197 = vmatprep.subr.bf16.mxu0 %v2196_v52  ;;  %v659_v46 = vld [vmem:[#allocation9 + $0x30] sm:$0xff]  ;;  %v2236_v52 = vpack.c.bf16 %v708_v41, %v707_v36  ;;  %v696_v41 = vld [vmem:[#allocation9 + $0x158] sm:$0xff] }
  0x8e   :  { %2229 = vmatprep.subr.bf16.mxu1 %v2228_v56  ;;  %v2206_v53 = vpack.c.bf16 %v660_v47, %v659_v46  ;;  %v678_v56 = vld [vmem:[#allocation9 + $0xc8] sm:$0xff]  ;;  %v681_v47 = vld [vmem:[#allocation9 + $0xe0] sm:$0xff] }
  0x8f   :  { %v2208_v58 = vpack.c.bf16 %v678_v56, %v677_v55  ;;  %v666_v55 = vld [vmem:[#allocation9 + $0x68] sm:$0xff] }
  0x90   :  { %2199 = vmatpush3.bf16.msra.mxu0 %v2198_v57  ;;  %v709_v57 = vld [vmem:[#allocation9 + $0x1c0] sm:$0xff] }
  0x91   :  { %2231 = vmatpush3.bf16.msra.mxu1 %v2230_v60  ;;  %2201 = vmatprep.subr.bf16.mxu0 %v2200_v3  ;;  %v661_v60 = vld [vmem:[#allocation9 + $0x40] sm:$0xff]  ;;  %v2240_v62 = vpack.c.bf16 %v710_v59, %v709_v57  ;;  %v698_v59 = vld [vmem:[#allocation9 + $0x168] sm:$0xff] }
  0x92   :  { %2233 = vmatprep.subr.bf16.mxu1 %v2232_v17  ;;  %v2210_v63 = vpack.c.bf16 %v662_v61, %v661_v60  ;;  %v693_v3 = vld [vmem:[#allocation9 + $0x140] sm:$0xff]  ;;  %v680_v17 = vld [vmem:[#allocation9 + $0xd8] sm:$0xff]  ;;  %v683_v61 = vld [vmem:[#allocation9 + $0xf0] sm:$0xff] }
  0x93   :  { %v2242_v9 = vpack.c.bf16 %v694_v8, %v693_v3  ;;  %v2212_v22 = vpack.c.bf16 %v680_v17, %v679_v13  ;;  %v716_v8 = vld [vmem:[#allocation9 + $0x1f8] sm:$0xff] }
  0x94   :  { %2203 = vmatpush3.bf16.msra.mxu0 %v2202_v18  ;;  %v711_v18 = vld [vmem:[#allocation9 + $0x1d0] sm:$0xff]  ;;  %v668_v13 = vld [vmem:[#allocation9 + $0x78] sm:$0xff] }
  0x95   :  { %2235 = vmatpush3.bf16.msra.mxu1 %v2234_v27  ;;  %2205 = vmatprep.subr.bf16.mxu0 %v2204_v37  ;;  %v663_v27 = vld [vmem:[#allocation9 + $0x50] sm:$0xff]  ;;  %v2244_v35 = vpack.c.bf16 %v712_v26, %v711_v18  ;;  %v700_v26 = vld [vmem:[#allocation9 + $0x178] sm:$0xff] }
  0x96   :  { %2237 = vmatprep.subr.bf16.mxu1 %v2236_v52  ;;  %v2214_v36 = vpack.c.bf16 %v664_v31, %v663_v27  ;;  %v695_v37 = vld [vmem:[#allocation9 + $0x150] sm:$0xff]  ;;  %v2216_v52 = vpack.c.bf16 %v682_v48, %v681_v47 }
  0x97   :  { %v2246_v46 = vpack.c.bf16 %v696_v41, %v695_v37 }
  0x98   :  { %2207 = vmatpush3.bf16.msra.mxu0 %v2206_v53  ;;  %v714_v53 = vld [vmem:[#allocation9 + $0x1e8] sm:$0xff] }
  0x99   :  { %2239 = vmatpush3.bf16.msra.mxu1 %v2238_v54  ;;  %2209 = vmatprep.subr.bf16.mxu0 %v2208_v58  ;;  %v665_v54 = vld [vmem:[#allocation9 + $0x60] sm:$0xff]  ;;  %v2248_v56 = vpack.c.bf16 %v714_v53, %v713_v51 }
  0x9a   :  { %2241 = vmatprep.subr.bf16.mxu1 %v2240_v62  ;;  %v2218_v57 = vpack.c.bf16 %v666_v55, %v665_v54  ;;  %v697_v58 = vld [vmem:[#allocation9 + $0x160] sm:$0xff]  ;;  %v684_v62 = vld [vmem:[#allocation9 + $0xf8] sm:$0xff] }
  0x9b   :  { %v2250_v60 = vpack.c.bf16 %v698_v59, %v697_v58  ;;  %v2220_v3 = vpack.c.bf16 %v684_v62, %v683_v61 }
  0x9c   :  { %2211 = vmatpush3.bf16.msra.mxu0 %v2210_v63  ;;  %v715_v63 = vld [vmem:[#allocation9 + $0x1f0] sm:$0xff] }
  0x9d   :  { %2243 = vmatpush3.bf16.msra.mxu1 %v2242_v9  ;;  %2213 = vmatprep.subr.bf16.mxu0 %v2212_v22  ;;  %v667_v9 = vld [vmem:[#allocation9 + $0x70] sm:$0xff]  ;;  %v2252_v17 = vpack.c.bf16 %v716_v8, %v715_v63 }
  0x9e   :  { %2245 = vmatprep.subr.bf16.mxu1 %v2244_v35  ;;  %v2222_v18 = vpack.c.bf16 %v668_v13, %v667_v9  ;;  %v699_v22 = vld [vmem:[#allocation9 + $0x170] sm:$0xff] }
  0x9f   :  { %v2254_v27 = vpack.c.bf16 %v700_v26, %v699_v22 }
  0xa0   :  { %2215 = vmatpush3.bf16.msra.mxu0 %v2214_v36 }
  0xa1   :  { %2247 = vmatpush3.bf16.msra.mxu1 %v2246_v46  ;;  %2217 = vmatprep.subr.bf16.mxu0 %v2216_v52 }
  0xa2   :  { %2249 = vmatprep.subr.bf16.mxu1 %v2248_v56 }
  0xa4   :  { %2219 = vmatpush3.bf16.msra.mxu0 %v2218_v57 }
  0xa5   :  { %2251 = vmatpush3.bf16.msra.mxu1 %v2250_v60  ;;  %2221 = vmatprep.subr.bf16.mxu0 %v2220_v3 }
  0xa6   :  { %2253 = vmatprep.subr.bf16.mxu1 %v2252_v17 }
  0xa8   :  { %2223 = vmatpush3.bf16.msra.mxu0 %v2222_v18 }
  0xa9   :  { %2255 = vmatpush3.bf16.msra.mxu1 %v2254_v27 }
 0x14e   :  { %v203_v31 = vpop.f32.mrb[0].mxu0 }
 0x14f   :  { %v274_v35 = vpop.f32.mrb[0].mxu1  ;;  %v205_v36 = vpop.f32.mrb[1].mxu0  ;;  %v455_v41 = vmul.f32 0.015625, %v203_v31 }
 0x150   :  { %v276_v37 = vpop.f32.mrb[1].mxu1  ;;  %v457_v46 = vmul.f32 0.015625, %v274_v35  ;;  %v456_v47 = vmul.f32 0.015625, %v205_v36  ;;  %v2592_v36 = vmov 1966171168  }
 0x151   :  { %v458_v48 = vmul.f32 0.015625, %v276_v37  ;;  %v463_v52 = vmul.f32 %v455_v41, %v455_v41  ;;  %v490_v37 = vunpack.c.l.s4 %v2592_v36 }
 0x152   :  { %v465_v56 = vmul.f32 %v457_v46, %v457_v46  ;;  %v464_v57 = vmul.f32 %v456_v47, %v456_v47 }
 0x153   :  { %v466_v61 = vmul.f32 %v458_v48, %v458_v48 }
 0x15e   :  { %v377_v51 = vpop.f32.mrb[2].mxu0 }
 0x15f   :  { %v459_v53 = vmul.f32 0.015625, %v377_v51  ;;  %v448_v54 = vpop.f32.mrb[2].mxu1  ;;  %v379_v55 = vpop.f32.mrb[3].mxu0  ;;  %v492_v51 = vlaneseq }
 0x160   :  { %v461_v58 = vmul.f32 0.015625, %v448_v54  ;;  %v460_v59 = vmul.f32 0.015625, %v379_v55  ;;  %v450_v60 = vpop.f32.mrb[3].mxu1 }
 0x161   :  { %v467_v62 = vsub.f32 %v459_v53, %v463_v52  ;;  %v462_v63 = vmul.f32 0.015625, %v450_v60  ;;  %v491_v52 = vunpack.c.0.s8 %v490_v37  ;;  %v2892_v53 = vshrl.u32 %v492_v51, 7 }
 0x162   :  { %v469_v3 = vsub.f32 %v461_v58, %v465_v56  ;;  %v468_v8 = vsub.f32 %v460_v59, %v464_v57 }
 0x163   :  { %v471_v9 = vmax.f32 %v467_v62, 0.0  ;;  %v470_v13 = vsub.f32 %v462_v63, %v466_v61  ;;  %v494_v56 = vsub.s32 %v491_v52, %v2892_v53 }
 0x164   :  { %v473_v17 = vmax.f32 %v469_v3, 0.0  ;;  %v472_v18 = vmax.f32 %v468_v8, 0.0  ;;  %v453_v3 = vld [vmem:[#allocation7] sm:$0xf]  ;;  %v2896_v8 = vsub.s32 0, %v2892_v53 }
 0x165   :  { %v475_v22 = vadd.f32 1e-05, %v471_v9  ;;  %v474_v26 = vmax.f32 %v470_v13, 0.0  ;;  %v520_v13 = vsub.s32 1, %v2892_v53 }
 0x166   :  { %v477_v27 = vadd.f32 1e-05, %v473_v17  ;;  %v476_v31 = vadd.f32 1e-05, %v472_v18  ;;  %v524_v17 = vsub.s32 2, %v2892_v53  ;;  %v528_v18 = vsub.s32 3, %v2892_v53 }
 0x167   :  { %2384 = vrsqrt.f32 %v475_v22  ;;  %v478_v35 = vadd.f32 1e-05, %v474_v26 }
 0x168   :  { %2386 = vrsqrt.f32 %v477_v27 }
 0x169   :  { %2388 = vrsqrt.f32 %v476_v31 }
 0x16a   :  { %2390 = vrsqrt.f32 %v478_v35 }
 0x171   :  { %v2385_v54 = vpop.eup %2384 }
 0x172   :  { %v2387_v55 = vpop.eup %2386 }
 0x173   :  { %v2389_v57 = vpop.eup %2388 }
 0x174   :  { %v2391_v58 = vpop.eup %2390  ;;  %v487_v59 = vcombine.low %v2385_v54, %v2389_v57 }
 0x175   :  { %v488_v60 = vcombine.low %v2387_v55, %v2391_v58 }
 0x176   :  { %v495_v61 = vrot.slane %v487_v59, %v494_v56 }
 0x177   :  { %v502_v62 = vrot.slane %v488_v60, %v494_v56 }
 0x179   :  { %v503_v63 = vcombine.low %v495_v61, %v502_v62 }
 0x17b   :  { %v510_v9 = vrot.slane %v503_v63, %v494_v56 }
 0x17d   :  { %v512_v22 = vmul.f32 %v510_v9, %v453_v3  ;;  %v454_v9 = vld [vmem:[#allocation7 + $0x4] sm:$0xf] }
 0x17f   :  { %v517_v26 = vrot.slane %v512_v22, %v2896_v8  ;;  %v521_v27 = vrot.slane %v512_v22, %v520_v13  ;;  %v525_v31 = vrot.slane %v512_v22, %v524_v17  ;;  %v529_v35 = vrot.slane %v512_v22, %v528_v18 }
 0x181   :  { %v534_v36 = vmul.f32 %v517_v26, %v455_v41  ;;  %v535_v37 = vmul.f32 %v521_v27, %v456_v47  ;;  %v536_v52 = vmul.f32 %v525_v31, %v457_v46  ;;  %v537_v54 = vmul.f32 %v529_v35, %v458_v48 }
 0x182   :  { %v569_v58 = vmul.f32 %v521_v27, %v2719_v0  ;;  %v571_v61 = vmul.f32 %v529_v35, %v2723_v2  ;;  %v568_v53 = vmul.f32 %v517_v26, %v2729_v5  ;;  %v570_v62 = vmul.f32 %v525_v31, %v2738_v10 }
 0x183   :  { %v542_v55 = vcombine.low %v534_v36, %v535_v37  ;;  %v543_v57 = vcombine.low %v536_v52, %v537_v54  ;;  %v573_v63 = vmul.f32 %v521_v27, %v2721_v1  ;;  %v575_v3 = vmul.f32 %v529_v35, %v2727_v4 }
 0x184   :  { %v572_v41 = vmul.f32 %v517_v26, %v2731_v6  ;;  %v574_v47 = vmul.f32 %v525_v31, %v2740_v11  ;;  %v577_v48 = vmul.f32 %v521_v27, %v2742_v12  ;;  %v579_v0 = vmul.f32 %v529_v35, %v2749_v15 }
 0x185   :  { %v550_v59 = vrot.slane %v542_v55, %v494_v56  ;;  %v557_v60 = vrot.slane %v543_v57, %v494_v56  ;;  %v576_v2 = vmul.f32 %v517_v26, %v2757_v19  ;;  %v578_v5 = vmul.f32 %v525_v31, %v2761_v21 }
 0x186   :  { %v581_v10 = vmul.f32 %v521_v27, %v2747_v14  ;;  %v583_v1 = vmul.f32 %v529_v35, %v2751_v16  ;;  %v580_v4 = vmul.f32 %v517_v26, %v2759_v20  ;;  %v582_v6 = vmul.f32 %v525_v31, %v2765_v23 }
 0x187   :  { %v558_v46 = vcombine.low %v550_v59, %v557_v60  ;;  %v585_v11 = vmul.f32 %v521_v27, %v2767_v24  ;;  %v587_v12 = vmul.f32 %v529_v35, %v2775_v28  ;;  %v584_v15 = vmul.f32 %v517_v26, %v2779_v30 }
 0x188   :  { %v586_v36 = vmul.f32 %v525_v31, %v2785_v33  ;;  %v589_v19 = vmul.f32 %v521_v27, %v2769_v25  ;;  %v591_v14 = vmul.f32 %v529_v35, %v2777_v29  ;;  %v588_v16 = vmul.f32 %v517_v26, %v2783_v32 }
 0x189   :  { %v565_v22 = vrot.slane %v558_v46, %v494_v56  ;;  %v590_v56 = vmul.f32 %v525_v31, %v2787_v34  ;;  %v593_v20 = vmul.f32 %v521_v27, %v2795_v38  ;;  %v595_v23 = vmul.f32 %v529_v35, %v2799_v40 }
 0x18a   :  { %v592_v24 = vmul.f32 %v517_v26, %v2807_v44  ;;  %v594_v28 = vmul.f32 %v525_v31, %v2817_v49  ;;  %v597_v52 = vmul.f32 %v521_v27, %v2797_v39  ;;  %v599_v29 = vmul.f32 %v529_v35, %v2805_v43 }
 0x18b   :  { %v567_v21 = vsub.f32 %v454_v9, %v565_v22  ;;  %v596_v32 = vmul.f32 %v517_v26, %v2809_v45  ;;  %v598_v34 = vmul.f32 %v525_v31, %v2819_v50 }
 0x18d   :  { %v608_v30 = vrot.slane %v567_v21, %v520_v13  ;;  %v612_v37 = vrot.slane %v567_v21, %v524_v17  ;;  %v616_v33 = vrot.slane %v567_v21, %v528_v18  ;;  %v604_v25 = vrot.slane %v567_v21, %v2896_v8 }
 0x18f   :  { %v622_v38 = vadd.f32 %v608_v30, %v569_v58  ;;  %v624_v54 = vadd.f32 %v616_v33, %v571_v61  ;;  %v621_v40 = vadd.f32 %v604_v25, %v568_v53  ;;  %v623_v55 = vadd.f32 %v612_v37, %v570_v62 }
 0x190   :  { %v626_v44 = vadd.f32 %v608_v30, %v573_v63  ;;  %v628_v57 = vadd.f32 %v616_v33, %v575_v3  ;;  %v625_v49 = vadd.f32 %v604_v25, %v572_v41  ;;  %v627_v13 = vadd.f32 %v612_v37, %v574_v47 }
 0x191   :  { %788 = vmatprep.mubr.f32.mxu0 %v622_v38  ;;  %893 = vmatprep.mubr.f32.mxu1 %v624_v54  ;;  %v630_v17 = vadd.f32 %v608_v30, %v577_v48  ;;  %v632_v18 = vadd.f32 %v616_v33, %v579_v0  ;;  %v629_v59 = vadd.f32 %v604_v25, %v576_v2  ;;  %v2593_v2 = vmov 0.0|0.0  }
 0x192   :  { %789 = vmatmul.mubr.f32.vlgmr.msra.gmra.mrb[4].mxu0 %v621_v40  ;;  %894 = vmatmul.mubr.f32.vlgmr.msra.gmra.mrb[4].mxu1 %v623_v55  ;;  %v631_v39 = vadd.f32 %v612_v37, %v578_v5  ;;  %v634_v43 = vadd.f32 %v608_v30, %v581_v10  ;;  %v636_v45 = vadd.f32 %v616_v33, %v583_v1  ;;  %v2938_v1 = vld [vmem:[#allocation7 + $0xc] ss:$0 sm:$0xff] }
 0x193   :  { %793 = vmatprep.mubr.f32.mxu0 %v626_v44  ;;  %898 = vmatprep.mubr.f32.mxu1 %v628_v57  ;;  %v633_v50 = vadd.f32 %v604_v25, %v580_v4  ;;  %v635_v26 = vadd.f32 %v612_v37, %v582_v6  ;;  %v638_v27 = vadd.f32 %v608_v30, %v585_v11 }
 0x194   :  { %v640_v31 = vadd.f32 %v616_v33, %v587_v12  ;;  %v637_v35 = vadd.f32 %v604_v25, %v584_v15  ;;  %v639_v58 = vadd.f32 %v612_v37, %v586_v36  ;;  %v642_v60 = vadd.f32 %v608_v30, %v589_v19  ;;  %2256 = vmatprep.subr.bf16.mxu1 %v2593_v2 }
 0x195   :  { %v644_v61 = vadd.f32 %v616_v33, %v591_v14  ;;  %v641_v53 = vadd.f32 %v604_v25, %v588_v16  ;;  %v643_v62 = vadd.f32 %v612_v37, %v590_v56  ;;  %v646_v63 = vadd.f32 %v608_v30, %v593_v20 }
 0x196   :  { %794 = vmatmul.mubr.f32.gmra.mrb[6].mxu0 %v625_v49  ;;  %899 = vmatmul.mubr.f32.gmra.mrb[6].mxu1 %v627_v13  ;;  %v648_v3 = vadd.f32 %v616_v33, %v595_v23  ;;  %v645_v41 = vadd.f32 %v604_v25, %v592_v24  ;;  %v647_v46 = vadd.f32 %v612_v37, %v594_v28  ;;  %v2941_v16 = vstv %s934_s5 }
 0x197   :  { %798 = vmatprep.mubr.f32.mxu0 %v630_v17  ;;  %903 = vmatprep.mubr.f32.mxu1 %v632_v18  ;;  %v650_v47 = vadd.f32 %v608_v30, %v597_v52  ;;  %v652_v48 = vadd.f32 %v616_v33, %v599_v29  ;;  %v649_v0 = vadd.f32 %v604_v25, %v596_v32 }
 0x198   :  { %v651_v9 = vadd.f32 %v612_v37, %v598_v34 }
 0x19a   :  { %799 = vmatmul.mubr.f32.gmra.mrb[8].mxu0 %v629_v59  ;;  %904 = vmatmul.mubr.f32.gmra.mrb[8].mxu1 %v631_v39 }
 0x19b   :  { %803 = vmatprep.mubr.f32.mxu0 %v634_v43  ;;  %908 = vmatprep.mubr.f32.mxu1 %v636_v45 }
 0x19e   :  { %804 = vmatmul.mubr.f32.gmra.mrb[10].mxu0 %v633_v50  ;;  %909 = vmatmul.mubr.f32.gmra.mrb[10].mxu1 %v635_v26 }
 0x19f   :  { %808 = vmatprep.mubr.f32.mxu0 %v638_v27  ;;  %913 = vmatprep.mubr.f32.mxu1 %v640_v31 }
 0x1a2   :  { %809 = vmatmul.mubr.f32.gmra.mrb[12].mxu0 %v637_v35  ;;  %914 = vmatmul.mubr.f32.gmra.mrb[12].mxu1 %v639_v58 }
 0x1a3   :  { %813 = vmatprep.mubr.f32.mxu0 %v642_v60  ;;  %918 = vmatprep.mubr.f32.mxu1 %v644_v61 }
 0x1a6   :  { %814 = vmatmul.mubr.f32.gmra.mrb[14].mxu0 %v641_v53  ;;  %919 = vmatmul.mubr.f32.gmra.mrb[14].mxu1 %v643_v62 }
 0x1a7   :  { %818 = vmatprep.mubr.f32.mxu0 %v646_v63  ;;  %923 = vmatprep.mubr.f32.mxu1 %v648_v3 }
 0x1aa   :  { %819 = vmatmul.mubr.f32.gmra.mrb[16].mxu0 %v645_v41  ;;  %924 = vmatmul.mubr.f32.gmra.mrb[16].mxu1 %v647_v46 }
 0x1ab   :  { %823 = vmatprep.mubr.f32.mxu0 %v650_v47  ;;  %928 = vmatprep.mubr.f32.mxu1 %v652_v48 }
 0x1ae   :  { %824 = vmatmul.mubr.f32.gmra.mrb[18].mxu0 %v649_v0  ;;  %929 = vmatmul.mubr.f32.gmra.mrb[18].mxu1 %v651_v9 }
 0x1af   :  { %1980 = vmatprep.mubr.msk.f32.mxu1 %vm2594_vm1, %v2590_v7 }
 0x265   :  { %v1800_v5 = vpop.f32.mrb[4].mxu0  ;;  %v1856_v10 = vpop.f32.mrb[4].mxu1 }
 0x266   :  { %v1801_v22 = vpop.f32.mrb[5].mxu0  ;;  %v1857_v4 = vpop.f32.mrb[5].mxu1 }
 0x267   :  { %v1802_v6 = vadd.f32 %v1801_v22, %v1800_v5  ;;  %v1858_v11 = vadd.f32 %v1857_v4, %v1856_v10 }
 0x269   :  { %v791_v12 = vadd.f32 %v1802_v6, %v2938_v1  ;;  %v1803_v15 = vpop.f32.mrb[6].mxu0  ;;  %v1859_v36 = vpop.f32.mrb[6].mxu1 }
 0x26a   :  { %v1804_v19 = vpop.f32.mrb[7].mxu0  ;;  %v1860_v21 = vpop.f32.mrb[7].mxu1 }
 0x26b   :  { %v896_v14 = vadd.f32 %v1858_v11, %v791_v12  ;;  %v1805_v56 = vadd.f32 %v1804_v19, %v1803_v15  ;;  %v1861_v20 = vadd.f32 %v1860_v21, %v1859_v36 }
 0x26d   :  { %v796_v23 = vadd.f32 %v1805_v56, %v2938_v1  ;;  %v1806_v24 = vpop.f32.mrb[8].mxu0  ;;  %v1862_v28 = vpop.f32.mrb[8].mxu1  ;;  %v944_v30 = vmul.f32 %v2941_v16, %v896_v14  ;;  %vm935_vm2 = vcmp.ge.f32.partialorder %v896_v14, 0.0 }
 0x26e   :  { %v1807_v37 = vpop.f32.mrb[9].mxu0  ;;  %v1863_v33 = vpop.f32.mrb[9].mxu1 }
 0x26f   :  { %v901_v25 = vadd.f32 %v1861_v20, %v796_v23  ;;  %v1808_v52 = vadd.f32 %v1807_v37, %v1806_v24  ;;  %v1864_v29 = vadd.f32 %v1863_v33, %v1862_v28  ;;  %v2947_v40 = vsel %vm935_vm2, %v896_v14, %v944_v30 }
 0x271   :  { %vm936_vm3 = vcmp.ge.f32.partialorder %v901_v25, 0.0  ;;  %v945_v32 = vmul.f32 %v2941_v16, %v901_v25  ;;  %v801_v34 = vadd.f32 %v1808_v52, %v2938_v1  ;;  %v1809_v38 = vpop.f32.mrb[10].mxu0  ;;  %v1865_v54 = vpop.f32.mrb[10].mxu1 }
 0x272   :  { %v1810_v55 = vpop.f32.mrb[11].mxu0  ;;  %v1866_v44 = vpop.f32.mrb[11].mxu1 }
 0x273   :  { %v2949_v57 = vsel %vm936_vm3, %v901_v25, %v945_v32  ;;  %v906_v49 = vadd.f32 %v1864_v29, %v801_v34  ;;  %v1811_v13 = vadd.f32 %v1810_v55, %v1809_v38  ;;  %v1867_v17 = vadd.f32 %v1866_v44, %v1865_v54 }
 0x274   :  { %v2257_v18 = vpack.c.bf16 %v2949_v57, %v2947_v40  ;;  %v1031_v54 = vmul.f32 %v2949_v57, %v2949_v57  ;;  %v1030_v55 = vmul.f32 %v2947_v40, %v2947_v40 }
 0x275   :  { %v806_v59 = vadd.f32 %v1811_v13, %v2938_v1  ;;  %v1812_v39 = vpop.f32.mrb[12].mxu0  ;;  %v1868_v43 = vpop.f32.mrb[12].mxu1  ;;  %v946_v45 = vmul.f32 %v2941_v16, %v906_v49  ;;  %vm937_vm4 = vcmp.ge.f32.partialorder %v906_v49, 0.0 }
 0x276   :  { %v1813_v50 = vpop.f32.mrb[13].mxu0  ;;  %v1869_v26 = vpop.f32.mrb[13].mxu1  ;;  %2258 = vmatpush3.bf16.msra.mxu1 %v2257_v18 }
 0x277   :  { %v911_v27 = vadd.f32 %v1867_v17, %v806_v59  ;;  %v1814_v31 = vadd.f32 %v1813_v50, %v1812_v39  ;;  %v1870_v35 = vadd.f32 %v1869_v26, %v1868_v43  ;;  %2259 = vmatprep.subr.bf16.mxu1 %v2593_v2  ;;  %v2958_v62 = vsel %vm937_vm4, %v906_v49, %v946_v45  ;;  %v1148_v50 = vld [vmem:[#allocation10] sm:$0xff]  ;;  %v1149_v26 = vld [vmem:[#allocation10 + $0x8] sm:$0xff] }
 0x278   :  { %v1032_v49 = vmul.f32 %v2958_v62, %v2958_v62 }
 0x279   :  { %vm938_vm5 = vcmp.ge.f32.partialorder %v911_v27, 0.0  ;;  %v947_v58 = vmul.f32 %v2941_v16, %v911_v27  ;;  %v811_v60 = vadd.f32 %v1814_v31, %v2938_v1  ;;  %v1815_v61 = vpop.f32.mrb[14].mxu0  ;;  %v1871_v53 = vpop.f32.mrb[14].mxu1  ;;  %v1150_v31 = vld [vmem:[#allocation10 + $0x10] sm:$0xff] }
 0x27a   :  { %v1816_v63 = vpop.f32.mrb[15].mxu0  ;;  %v1872_v3 = vpop.f32.mrb[15].mxu1 }
 0x27b   :  { %v2960_v41 = vsel %vm938_vm5, %v911_v27, %v947_v58  ;;  %v916_v46 = vadd.f32 %v1870_v35, %v811_v60  ;;  %v1817_v47 = vadd.f32 %v1816_v63, %v1815_v61  ;;  %v1873_v48 = vadd.f32 %v1872_v3, %v1871_v53  ;;  %v1151_v35 = vld [vmem:[#allocation10 + $0x18] sm:$0xff]  ;;  %v1152_v60 = vld [vmem:[#allocation10 + $0x20] sm:$0xff]  ;;  %v1153_v61 = vld [vmem:[#allocation10 + $0x28] sm:$0xff] }
 0x27c   :  { %v2260_v0 = vpack.c.bf16 %v2960_v41, %v2958_v62  ;;  %v1033_v44 = vmul.f32 %v2960_v41, %v2960_v41  ;;  %v2280_v27 = vpack.c.bf16 %v1149_v26, %v1148_v50  ;;  %v2284_v58 = vpack.c.bf16 %v1151_v35, %v1150_v31  ;;  %v1154_v63 = vld [vmem:[#allocation10 + $0x30] sm:$0xff]  ;;  %v1155_v3 = vld [vmem:[#allocation10 + $0x38] sm:$0xff] }
 0x27d   :  { %v816_v9 = vadd.f32 %v1817_v47, %v2938_v1  ;;  %v1818_v5 = vpop.f32.mrb[16].mxu0  ;;  %v1874_v10 = vpop.f32.mrb[16].mxu1  ;;  %v948_v22 = vmul.f32 %v2941_v16, %v916_v46  ;;  %vm939_vm6 = vcmp.ge.f32.partialorder %v916_v46, 0.0  ;;  %v2288_v53 = vpack.c.bf16 %v1153_v61, %v1152_v60  ;;  %v1156_v47 = vld [vmem:[#allocation10 + $0x40] sm:$0xff] }
 0x27e   :  { %v1819_v4 = vpop.f32.mrb[17].mxu0  ;;  %v1875_v6 = vpop.f32.mrb[17].mxu1  ;;  %2261 = vmatpush3.bf16.msra.mxu1 %v2260_v0  ;;  %v2272_v17 = vpack.c.bf16 %v1033_v44, %v1032_v49  ;;  %2281 = vmatprep.subr.bf16.mxu0 %v2280_v27 }
 0x27f   :  { %v921_v11 = vadd.f32 %v1873_v48, %v816_v9  ;;  %v1820_v12 = vadd.f32 %v1819_v4, %v1818_v5  ;;  %v1876_v15 = vadd.f32 %v1875_v6, %v1874_v10  ;;  %2262 = vmatprep.subr.bf16.mxu1 %v2593_v2  ;;  %v2969_v56 = vsel %vm939_vm6, %v916_v46, %v948_v22  ;;  %v1157_v48 = vld [vmem:[#allocation10 + $0x48] sm:$0xff]  ;;  %v1158_v9 = vld [vmem:[#allocation10 + $0x50] sm:$0xff]  ;;  %v1159_v5 = vld [vmem:[#allocation10 + $0x58] sm:$0xff] }
 0x280   :  { %v1034_v18 = vmul.f32 %v2969_v56, %v2969_v56  ;;  %2283 = vmatpush3.bf16.msra.mxu0 %v2280_v27  ;;  %v2292_v46 = vpack.c.bf16 %v1155_v3, %v1154_v63  ;;  %v2296_v0 = vpack.c.bf16 %v1157_v48, %v1156_v47  ;;  %v1160_v10 = vld [vmem:[#allocation10 + $0x60] sm:$0xff]  ;;  %v2300_v22 = vpack.c.bf16 %v1159_v5, %v1158_v9  ;;  %v1161_v4 = vld [vmem:[#allocation10 + $0x68] sm:$0xff] }
 0x281   :  { %vm940_vm7 = vcmp.ge.f32.partialorder %v921_v11, 0.0  ;;  %v949_v36 = vmul.f32 %v2941_v16, %v921_v11  ;;  %v821_v19 = vadd.f32 %v1820_v12, %v2938_v1  ;;  %v1821_v21 = vpop.f32.mrb[18].mxu0  ;;  %v1877_v14 = vpop.f32.mrb[18].mxu1  ;;  %2285 = vmatprep.subr.bf16.mxu0 %v2284_v58  ;;  %v2304_v6 = vpack.c.bf16 %v1161_v4, %v1160_v10  ;;  %v1163_v12 = vld [vmem:[#allocation10 + $0x78] sm:$0xff] }
 0x282   :  { %v1822_v20 = vpop.f32.mrb[19].mxu0  ;;  %v1878_v23 = vpop.f32.mrb[19].mxu1 }
 0x283   :  { %v2971_v24 = vsel %vm940_vm7, %v921_v11, %v949_v36  ;;  %v926_v28 = vadd.f32 %v1876_v15, %v821_v19  ;;  %v1823_v30 = vadd.f32 %v1822_v20, %v1821_v21  ;;  %v1879_v37 = vadd.f32 %v1878_v23, %v1877_v14  ;;  %v1162_v11 = vld [vmem:[#allocation10 + $0x70] sm:$0xff] }
 0x284   :  { %v2263_v33 = vpack.c.bf16 %v2971_v24, %v2969_v56  ;;  %v1035_v13 = vmul.f32 %v2971_v24, %v2971_v24  ;;  %2287 = vmatpush3.bf16.msra.mxu0 %v2284_v58  ;;  %v2308_v15 = vpack.c.bf16 %v1163_v12, %v1162_v11 }
 0x285   :  { %v826_v25 = vadd.f32 %v1823_v30, %v2938_v1  ;;  %v950_v52 = vmul.f32 %v2941_v16, %v926_v28  ;;  %vm941_vm8 = vcmp.ge.f32.partialorder %v926_v28, 0.0  ;;  %2289 = vmatprep.subr.bf16.mxu0 %v2288_v53 }
 0x286   :  { %2264 = vmatpush3.bf16.msra.mxu1 %v2263_v33  ;;  %v2275_v39 = vpack.c.bf16 %v1035_v13, %v1034_v18 }
 0x287   :  { %v931_v29 = vadd.f32 %v1879_v37, %v826_v25  ;;  %2265 = vmatprep.subr.bf16.mxu1 %v2593_v2  ;;  %v2979_v34 = vsel %vm941_vm8, %v926_v28, %v950_v52  ;;  %v1108_v25 = vld [vmem:[#allocation7 + $0x8] sm:$0x1] }
 0x288   :  { %v1036_v43 = vmul.f32 %v2979_v34, %v2979_v34  ;;  %2291 = vmatpush3.bf16.msra.mxu0 %v2288_v53 }
 0x289   :  { %vm942_vm9 = vcmp.ge.f32.partialorder %v931_v29, 0.0  ;;  %v951_v32 = vmul.f32 %v2941_v16, %v931_v29  ;;  %v2269_v16 = vpack.c.bf16 %v1031_v54, %v1030_v55  ;;  %2293 = vmatprep.subr.bf16.mxu0 %v2292_v46 }
 0x28b   :  { %v2981_v38 = vsel %vm942_vm9, %v931_v29, %v951_v32  ;;  %v1109_v32 = vld [vmem:[#allocation7 + $0x9] sm:$0x1] }
 0x28c   :  { %v2266_v1 = vpack.c.bf16 %v2981_v38, %v2979_v34  ;;  %v1037_v59 = vmul.f32 %v2981_v38, %v2981_v38  ;;  %2295 = vmatpush3.bf16.msra.mxu0 %v2292_v46 }
 0x28d   :  { %2297 = vmatprep.subr.bf16.mxu0 %v2296_v0 }
 0x28e   :  { %2267 = vmatpush3.bf16.msra.mxu1 %v2266_v1  ;;  %v2278_v45 = vpack.c.bf16 %v1037_v59, %v1036_v43 }
 0x28f   :  { %2268 = vmatprep.subr.bf16.mxu1 %v2593_v2 }
 0x290   :  { %2299 = vmatpush3.bf16.msra.mxu0 %v2296_v0 }
 0x291   :  { %1981 = vmatmul.mubr.msk.f32.vlgmr.msra.gmra.mrb[20].mxu1 %vm133_vm0, %v2591_v42  ;;  %2301 = vmatprep.subr.bf16.mxu0 %v2300_v22 }
 0x292   :  { %2270 = vmatpush3.bf16.msra.mxu1 %v2269_v16  ;;  %1999 = vmatprep.mubr.msk.f32.mxu1 %vm2594_vm1, %v2590_v7 }
 0x293   :  { %2271 = vmatprep.subr.bf16.mxu1 %v2593_v2 }
 0x294   :  { %2303 = vmatpush3.bf16.msra.mxu0 %v2300_v22 }
 0x295   :  { %2305 = vmatprep.subr.bf16.mxu0 %v2304_v6 }
 0x296   :  { %2273 = vmatpush3.bf16.msra.mxu1 %v2272_v17 }
 0x297   :  { %2274 = vmatprep.subr.bf16.mxu1 %v2593_v2 }
 0x298   :  { %2307 = vmatpush3.bf16.msra.mxu0 %v2304_v6 }
 0x299   :  { %2309 = vmatprep.subr.bf16.mxu0 %v2308_v15 }
 0x29a   :  { %2276 = vmatpush3.bf16.msra.mxu1 %v2275_v39 }
 0x29b   :  { %2277 = vmatprep.subr.bf16.mxu1 %v2593_v2 }
 0x29c   :  { %2311 = vmatpush3.bf16.msra.mxu0 %v2308_v15 }
 0x29e   :  { %2279 = vmatpush3.bf16.msra.mxu1 %v2278_v45 }
 0x29f   :  { %2312 = vmatprep.subr.bf16.mxu1 %v2593_v2 }
 0x2a1   :  { %2000 = vmatmul.mubr.msk.f32.vlgmr.msra.gmra.mrb[22].mxu1 %vm133_vm0, %v2591_v42 }
 0x2a2   :  { %2062 = vmatprep.mubr.msk.f32.mxu1 %vm2594_vm1, %v2590_v7 }
 0x364   :  { %v1026_v36 = vpop.f32.mrb[20].mxu1 }
 0x365   :  { %v1982_v19 = vpop.f32.mrb[21].mxu1  ;;  %v1110_v21 = vmul.f32 0.015625, %v1026_v36 }
 0x367   :  { %v1112_v20 = vmul.f32 %v1110_v21, %v1110_v21 }
 0x374   :  { %v1104_v14 = vpop.f32.mrb[22].mxu1 }
 0x375   :  { %v1111_v23 = vmul.f32 0.015625, %v1104_v14  ;;  %v2001_v28 = vpop.f32.mrb[23].mxu1 }
 0x377   :  { %v1113_v30 = vsub.f32 %v1111_v23, %v1112_v20 }
 0x379   :  { %v1114_v37 = vmax.f32 %v1113_v30, 0.0 }
 0x37b   :  { %v1115_v33 = vadd.f32 1e-05, %v1114_v37 }
 0x37d   :  { %2392 = vrsqrt.f32 %v1115_v33 }
 0x387   :  { %v2393_v52 = vpop.eup %2392 }
 0x388   :  { %v1117_v29 = vmul.f32 %v2393_v52, %v1108_v25 }
 0x38a   :  { %v1118_v54 = vmul.f32 %v1117_v29, %v1110_v21  ;;  %v1124_v1 = vrot.slane %v1117_v29, %v2896_v8 }
 0x38c   :  { %v1119_v55 = vsub.f32 %v1109_v32, %v1118_v54  ;;  %v1126_v44 = vmul.f32 %v1124_v1, %v2947_v40  ;;  %v1127_v49 = vmul.f32 %v1124_v1, %v2949_v57  ;;  %v1128_v13 = vmul.f32 %v1124_v1, %v2958_v62  ;;  %v1762_v62 = vld [vmem:[#allocation7 + $0xd] ss:$0 sm:$0xff] }
 0x38d   :  { %v1129_v17 = vmul.f32 %v1124_v1, %v2960_v41  ;;  %v1130_v18 = vmul.f32 %v1124_v1, %v2969_v56  ;;  %v1131_v59 = vmul.f32 %v1124_v1, %v2971_v24  ;;  %v1132_v39 = vmul.f32 %v1124_v1, %v2979_v34 }
 0x38e   :  { %v1138_v16 = vrot.slane %v1119_v55, %v2896_v8  ;;  %v1133_v43 = vmul.f32 %v1124_v1, %v2981_v38  ;;  %v1285_v56 = vstv %s1763_s18 }
 0x390   :  { %v1140_v45 = vadd.f32 %v1138_v16, %v1126_v44  ;;  %v1141_v50 = vadd.f32 %v1138_v16, %v1127_v49  ;;  %v1142_v26 = vadd.f32 %v1138_v16, %v1128_v13  ;;  %v1143_v40 = vadd.f32 %v1138_v16, %v1129_v17 }
 0x391   :  { %v1144_v27 = vadd.f32 %v1138_v16, %v1130_v18  ;;  %v1145_v31 = vadd.f32 %v1138_v16, %v1131_v59  ;;  %v1146_v35 = vadd.f32 %v1138_v16, %v1132_v39  ;;  %v1147_v57 = vadd.f32 %v1138_v16, %v1133_v43  ;;  %v1490_v39 = vld [vmem:[#allocation12] sm:$0xff]  ;;  %v1491_v43 = vld [vmem:[#allocation12 + $0x8] sm:$0xff] }
 0x392   :  { %2034 = vmatprep.mubr.f32.mxu0 %v1140_v45  ;;  %v2336_v45 = vpack.c.bf16 %v1491_v43, %v1490_v39 }
 0x393   :  { %2035 = vmatmul.mubr.f32.vlgmr.msra.gmra.mrb[20].mxu0 %v1141_v50  ;;  %v1492_v50 = vld [vmem:[#allocation12 + $0x10] sm:$0xff] }
 0x394   :  { %2037 = vmatprep.mubr.f32.mxu0 %v1142_v26  ;;  %2337 = vmatprep.subr.bf16.mxu0 %v2336_v45  ;;  %v1493_v26 = vld [vmem:[#allocation12 + $0x18] sm:$0xff] }
 0x395   :  { %2339 = vmatpush3.bf16.msra.mxu0 %v2336_v45 }
 0x397   :  { %2038 = vmatmul.mubr.f32.gmra.mrb[22].mxu0 %v1143_v40  ;;  %v2340_v40 = vpack.c.bf16 %v1493_v26, %v1492_v50 }
 0x398   :  { %2040 = vmatprep.mubr.f32.mxu0 %v1144_v27  ;;  %v1494_v27 = vld [vmem:[#allocation12 + $0x20] sm:$0xff] }
 0x399   :  { %2341 = vmatprep.subr.bf16.mxu0 %v2340_v40 }
 0x39a   :  { %2343 = vmatpush3.bf16.msra.mxu0 %v2340_v40 }
 0x39b   :  { %2041 = vmatmul.mubr.f32.gmra.mrb[24].mxu0 %v1145_v31  ;;  %v1495_v31 = vld [vmem:[#allocation12 + $0x28] sm:$0xff] }
 0x39c   :  { %2043 = vmatprep.mubr.f32.mxu0 %v1146_v35  ;;  %v2344_v35 = vpack.c.bf16 %v1495_v31, %v1494_v27 }
 0x39e   :  { %2345 = vmatprep.subr.bf16.mxu0 %v2344_v35 }
 0x39f   :  { %2044 = vmatmul.mubr.f32.gmra.mrb[26].mxu0 %v1147_v57  ;;  %v1497_v57 = vld [vmem:[#allocation12 + $0x38] sm:$0xff] }
 0x3a0   :  { %2347 = vmatpush3.bf16.msra.mxu0 %v2344_v35 }
 0x466   :  { %v2036_v41 = vpop.f32.mrb[20].mxu0 }
 0x467   :  { %v1243_v24 = vadd.f32 %v2036_v41, %v1762_v62  ;;  %v1237_v34 = vpop.f32.mrb[21].mxu0  ;;  %v1499_v41 = vld [vmem:[#allocation12 + $0x48] sm:$0xff] }
 0x468   :  { %v1238_v38 = vadd.f32 %v1762_v62, %v1237_v34  ;;  %v1501_v34 = vld [vmem:[#allocation12 + $0x58] sm:$0xff] }
 0x469   :  { %vm1278_vm10 = vcmp.ge.f32.partialorder %v1243_v24, 0.0  ;;  %v1287_v58 = vmul.f32 %v1285_v56, %v1243_v24 }
 0x46a   :  { %vm1277_vm11 = vcmp.ge.f32.partialorder %v1238_v38, 0.0  ;;  %v1286_v60 = vmul.f32 %v1285_v56, %v1238_v38  ;;  %v2039_v61 = vpop.f32.mrb[22].mxu0 }
 0x46b   :  { %v3024_v53 = vsel %vm1278_vm10, %v1243_v24, %v1287_v58  ;;  %v1253_v63 = vadd.f32 %v2039_v61, %v1762_v62  ;;  %v1247_v3 = vpop.f32.mrb[23].mxu0  ;;  %v1500_v24 = vld [vmem:[#allocation12 + $0x50] sm:$0xff] }
 0x46c   :  { %v3026_v46 = vsel %vm1277_vm11, %v1238_v38, %v1286_v60  ;;  %v1248_v47 = vadd.f32 %v1762_v62, %v1247_v3  ;;  %v1373_v29 = vmul.f32 %v3024_v53, %v3024_v53  ;;  %v1502_v38 = vld [vmem:[#allocation12 + $0x60] sm:$0xff]  ;;  %v2356_v58 = vpack.c.bf16 %v1501_v34, %v1500_v24  ;;  %v1503_v60 = vld [vmem:[#allocation12 + $0x68] sm:$0xff]  ;;  %v1505_v3 = vld [vmem:[#allocation12 + $0x78] sm:$0xff] }
 0x46d   :  { %v2313_v48 = vpack.c.bf16 %v3024_v53, %v3026_v46  ;;  %vm1280_vm12 = vcmp.ge.f32.partialorder %v1253_v63, 0.0  ;;  %v1289_v0 = vmul.f32 %v1285_v56, %v1253_v63  ;;  %v1372_v32 = vmul.f32 %v3026_v46, %v3026_v46 }
 0x46e   :  { %vm1279_vm13 = vcmp.ge.f32.partialorder %v1248_v47, 0.0  ;;  %v1288_v9 = vmul.f32 %v1285_v56, %v1248_v47  ;;  %v2042_v5 = vpop.f32.mrb[24].mxu0  ;;  %v2360_v61 = vpack.c.bf16 %v1503_v60, %v1502_v38 }
 0x46f   :  { %v3030_v10 = vsel %vm1280_vm12, %v1253_v63, %v1289_v0  ;;  %v1263_v22 = vadd.f32 %v2042_v5, %v1762_v62  ;;  %v1257_v4 = vpop.f32.mrb[25].mxu0  ;;  %2314 = vmatpush3.bf16.msra.mxu1 %v2313_v48  ;;  %v2325_v44 = vpack.c.bf16 %v1373_v29, %v1372_v32  ;;  %v1504_v63 = vld [vmem:[#allocation12 + $0x70] sm:$0xff] }
 0x470   :  { %v3032_v6 = vsel %vm1279_vm13, %v1248_v47, %v1288_v9  ;;  %v1258_v11 = vadd.f32 %v1762_v62, %v1257_v4  ;;  %2315 = vmatprep.subr.bf16.mxu1 %v2593_v2  ;;  %v1375_v1 = vmul.f32 %v3030_v10, %v3030_v10  ;;  %v2364_v47 = vpack.c.bf16 %v1505_v3, %v1504_v63 }
 0x471   :  { %v2316_v12 = vpack.c.bf16 %v3030_v10, %v3032_v6  ;;  %vm1282_vm14 = vcmp.ge.f32.partialorder %v1263_v22, 0.0  ;;  %v1291_v15 = vmul.f32 %v1285_v56, %v1263_v22  ;;  %v1374_v55 = vmul.f32 %v3032_v6, %v3032_v6 }
 0x472   :  { %vm1281_vm15 = vcmp.ge.f32.partialorder %v1258_v11, 0.0  ;;  %v1290_v36 = vmul.f32 %v1285_v56, %v1258_v11  ;;  %v2045_v19 = vpop.f32.mrb[26].mxu0 }
 0x473   :  { %v3037_v21 = vsel %vm1282_vm14, %v1263_v22, %v1291_v15  ;;  %v1273_v14 = vadd.f32 %v2045_v19, %v1762_v62  ;;  %v1267_v20 = vpop.f32.mrb[27].mxu0  ;;  %2317 = vmatpush3.bf16.msra.mxu1 %v2316_v12  ;;  %v2328_v13 = vpack.c.bf16 %v1375_v1, %v1374_v55  ;;  %v1450_v19 = vld [vmem:[#allocation7 + $0xa] sm:$0x1] }
 0x474   :  { %v3039_v23 = vsel %vm1281_vm15, %v1258_v11, %v1290_v36  ;;  %v1268_v28 = vadd.f32 %v1762_v62, %v1267_v20  ;;  %2318 = vmatprep.subr.bf16.mxu1 %v2593_v2  ;;  %v1377_v16 = vmul.f32 %v3037_v21, %v3037_v21 }
 0x475   :  { %v2319_v30 = vpack.c.bf16 %v3037_v21, %v3039_v23  ;;  %vm1284_vm2 = vcmp.ge.f32.partialorder %v1273_v14, 0.0  ;;  %v1293_v37 = vmul.f32 %v1285_v56, %v1273_v14  ;;  %v1376_v49 = vmul.f32 %v3039_v23, %v3039_v23 }
 0x476   :  { %vm1283_vm3 = vcmp.ge.f32.partialorder %v1268_v28, 0.0  ;;  %v1292_v33 = vmul.f32 %v1285_v56, %v1268_v28 }
 0x477   :  { %v3044_v25 = vsel %vm1284_vm2, %v1273_v14, %v1293_v37  ;;  %2320 = vmatpush3.bf16.msra.mxu1 %v2319_v30  ;;  %v2331_v59 = vpack.c.bf16 %v1377_v16, %v1376_v49 }
 0x478   :  { %v3046_v52 = vsel %vm1283_vm3, %v1268_v28, %v1292_v33  ;;  %2321 = vmatprep.subr.bf16.mxu1 %v2593_v2  ;;  %v1379_v17 = vmul.f32 %v3044_v25, %v3044_v25  ;;  %v1451_v28 = vld [vmem:[#allocation7 + $0xb] sm:$0x1] }
 0x479   :  { %v2322_v54 = vpack.c.bf16 %v3044_v25, %v3046_v52  ;;  %v1378_v18 = vmul.f32 %v3046_v52, %v3046_v52 }
 0x47b   :  { %2323 = vmatpush3.bf16.msra.mxu1 %v2322_v54 }
 0x47c   :  { %2324 = vmatprep.subr.bf16.mxu1 %v2593_v2 }
 0x47e   :  { %2063 = vmatmul.mubr.msk.f32.vlgmr.msra.gmra.mrb[24].mxu1 %vm133_vm0, %v2591_v42 }
 0x47f   :  { %2326 = vmatpush3.bf16.msra.mxu1 %v2325_v44  ;;  %2081 = vmatprep.mubr.msk.f32.mxu1 %vm2594_vm1, %v2590_v7  ;;  %v2334_v7 = vpack.c.bf16 %v1379_v17, %v1378_v18 }
 0x480   :  { %2327 = vmatprep.subr.bf16.mxu1 %v2593_v2 }
 0x483   :  { %2329 = vmatpush3.bf16.msra.mxu1 %v2328_v13 }
 0x484   :  { %2330 = vmatprep.subr.bf16.mxu1 %v2593_v2 }
 0x487   :  { %2332 = vmatpush3.bf16.msra.mxu1 %v2331_v59 }
 0x488   :  { %2333 = vmatprep.subr.bf16.mxu1 %v2593_v2  ;;  %v1496_v2 = vld [vmem:[#allocation12 + $0x30] sm:$0xff] }
 0x489   :  { %v2348_v62 = vpack.c.bf16 %v1497_v57, %v1496_v2 }
 0x48b   :  { %2335 = vmatpush3.bf16.msra.mxu1 %v2334_v7  ;;  %2349 = vmatprep.subr.bf16.mxu0 %v2348_v62 }
 0x48c   :  { %2351 = vmatpush3.bf16.msra.mxu0 %v2348_v62 }
 0x48e   :  { %2082 = vmatmul.mubr.msk.f32.vlgmr.msra.gmra.mrb[26].mxu1 %vm133_vm0, %v2591_v42  ;;  %v1498_v42 = vld [vmem:[#allocation12 + $0x40] sm:$0xff] }
 0x48f   :  { %v2352_v56 = vpack.c.bf16 %v1499_v41, %v1498_v42 }
 0x491   :  { %2353 = vmatprep.subr.bf16.mxu0 %v2352_v56 }
 0x492   :  { %2355 = vmatpush3.bf16.msra.mxu0 %v2352_v56 }
 0x493   :  { %2357 = vmatprep.subr.bf16.mxu0 %v2356_v58 }
 0x496   :  { %2359 = vmatpush3.bf16.msra.mxu0 %v2356_v58 }
 0x497   :  { %2361 = vmatprep.subr.bf16.mxu0 %v2360_v61 }
 0x49a   :  { %2363 = vmatpush3.bf16.msra.mxu0 %v2360_v61 }
 0x49b   :  { %2365 = vmatprep.subr.bf16.mxu0 %v2364_v47 }
 0x49e   :  { %2367 = vmatpush3.bf16.msra.mxu0 %v2364_v47 }
 0x551   :  { %v1368_v48 = vpop.f32.mrb[24].mxu1 }
 0x552   :  { %v2064_v0 = vpop.f32.mrb[25].mxu1  ;;  %v1452_v9 = vmul.f32 0.015625, %v1368_v48 }
 0x554   :  { %v1454_v22 = vmul.f32 %v1452_v9, %v1452_v9 }
 0x561   :  { %v1446_v5 = vpop.f32.mrb[26].mxu1 }
 0x562   :  { %v1453_v4 = vmul.f32 0.015625, %v1446_v5  ;;  %v2083_v11 = vpop.f32.mrb[27].mxu1 }
 0x564   :  { %v1455_v12 = vsub.f32 %v1453_v4, %v1454_v22 }
 0x566   :  { %v1456_v15 = vmax.f32 %v1455_v12, 0.0 }
 0x568   :  { %v1457_v36 = vadd.f32 1e-05, %v1456_v15 }
 0x56a   :  { %2394 = vrsqrt.f32 %v1457_v36 }
 0x574   :  { %v2395_v14 = vpop.eup %2394 }
 0x575   :  { %v1459_v20 = vmul.f32 %v2395_v14, %v1450_v19 }
 0x577   :  { %v1460_v30 = vmul.f32 %v1459_v20, %v1452_v9  ;;  %v1466_v37 = vrot.slane %v1459_v20, %v2896_v8 }
 0x579   :  { %v1461_v33 = vsub.f32 %v1451_v28, %v1460_v30  ;;  %v1468_v29 = vmul.f32 %v1466_v37, %v3026_v46  ;;  %v1469_v54 = vmul.f32 %v1466_v37, %v3024_v53  ;;  %v1470_v1 = vmul.f32 %v1466_v37, %v3032_v6 }
 0x57a   :  { %v1471_v55 = vmul.f32 %v1466_v37, %v3030_v10  ;;  %v1472_v44 = vmul.f32 %v1466_v37, %v3039_v23  ;;  %v1473_v16 = vmul.f32 %v1466_v37, %v3037_v21  ;;  %v1474_v49 = vmul.f32 %v1466_v37, %v3046_v52  ;;  %v1766_v10 = vld [vmem:[#allocation7 + $0xe] ss:$0 sm:$0xff] }
 0x57b   :  { %v1480_v32 = vrot.slane %v1461_v33, %v2896_v8  ;;  %v1475_v13 = vmul.f32 %v1466_v37, %v3044_v25  ;;  %v1645_v6 = vand.u32 127, %v492_v51  ;;  %v1627_v23 = vstv %s1767_s19 }
 0x57d   :  { %v1482_v17 = vadd.f32 %v1480_v32, %v1468_v29  ;;  %v1483_v18 = vadd.f32 %v1480_v32, %v1469_v54  ;;  %v1484_v59 = vadd.f32 %v1480_v32, %v1470_v1  ;;  %v1485_v46 = vadd.f32 %v1480_v32, %v1471_v55 }
 0x57e   :  { %v1486_v7 = vadd.f32 %v1480_v32, %v1472_v44  ;;  %v1487_v8 = vadd.f32 %v1480_v32, %v1473_v16  ;;  %v1488_v39 = vadd.f32 %v1480_v32, %v1474_v49  ;;  %v1489_v53 = vadd.f32 %v1480_v32, %v1475_v13 }
 0x57f   :  { %2116 = vmatprep.mubr.f32.mxu0 %v1482_v17  ;;  %vm1646_vm1 = vcmp.lt.s32.totalorder %v1645_v6, 2 }
 0x580   :  { %2117 = vmatmul.mubr.f32.vlgmr.msra.gmra.mrb[28].mxu0 %v1483_v18 }
 0x581   :  { %2119 = vmatprep.mubr.f32.mxu0 %v1484_v59 }
 0x584   :  { %2120 = vmatmul.mubr.f32.gmra.mrb[30].mxu0 %v1485_v46 }
 0x585   :  { %2122 = vmatprep.mubr.f32.mxu0 %v1486_v7 }
 0x588   :  { %2123 = vmatmul.mubr.f32.gmra.mrb[32].mxu0 %v1487_v8 }
 0x589   :  { %2125 = vmatprep.mubr.f32.mxu0 %v1488_v39 }
 0x58c   :  { %2126 = vmatmul.mubr.f32.gmra.mrb[34].mxu0 %v1489_v53 }
 0x653   :  { %v2118_v21 = vpop.f32.mrb[28].mxu0 }
 0x654   :  { %v1585_v25 = vadd.f32 %v2118_v21, %v1766_v10  ;;  %v1579_v52 = vpop.f32.mrb[29].mxu0 }
 0x655   :  { %v1580_v43 = vadd.f32 %v1766_v10, %v1579_v52 }
 0x656   :  { %v1629_v45 = vmul.f32 %v1627_v23, %v1585_v25  ;;  %vm1620_vm0 = vcmp.ge.f32.partialorder %v1585_v25, 0.0 }
 0x657   :  { %v1628_v50 = vmul.f32 %v1627_v23, %v1580_v43  ;;  %v2121_v26 = vpop.f32.mrb[30].mxu0  ;;  %vm1619_vm4 = vcmp.ge.f32.partialorder %v1580_v43, 0.0 }
 0x658   :  { %v1595_v40 = vadd.f32 %v2121_v26, %v1766_v10  ;;  %v1589_v27 = vpop.f32.mrb[31].mxu0  ;;  %v1637_v31 = vsel %vm1620_vm0, %v1585_v25, %v1629_v45 }
 0x659   :  { %v1590_v35 = vadd.f32 %v1766_v10, %v1589_v27  ;;  %v1648_v2 = vsel %vm1646_vm1, %v1637_v31, -inf  ;;  %v1636_v51 = vsel %vm1619_vm4, %v1580_v43, %v1628_v50 }
 0x65a   :  { %v1631_v57 = vmul.f32 %v1627_v23, %v1595_v40  ;;  %1657 = vmax.xlane.f32.xlu0 %v1648_v2  ;;  %vm1622_vm5 = vcmp.ge.f32.partialorder %v1595_v40, 0.0  ;;  %v1647_v58 = vsel %vm1646_vm1, %v1636_v51, -inf }
 0x65b   :  { %v1630_v62 = vmul.f32 %v1627_v23, %v1590_v35  ;;  %v2124_v42 = vpop.f32.mrb[32].mxu0  ;;  %vm1621_vm6 = vcmp.ge.f32.partialorder %v1590_v35, 0.0 }
 0x65c   :  { %v1605_v41 = vadd.f32 %v2124_v42, %v1766_v10  ;;  %v1599_v56 = vpop.f32.mrb[33].mxu0  ;;  %v1639_v24 = vsel %vm1622_vm5, %v1595_v40, %v1631_v57 }
 0x65d   :  { %v1600_v34 = vadd.f32 %v1766_v10, %v1599_v56  ;;  %v1650_v38 = vsel %vm1646_vm1, %v1639_v24, -inf  ;;  %v1638_v61 = vsel %vm1621_vm6, %v1590_v35, %v1630_v62 }
 0x65e   :  { %v1633_v60 = vmul.f32 %v1627_v23, %v1605_v41  ;;  %1661 = vmax.xlane.f32.xlu1 %v1650_v38  ;;  %1655 = vmax.xlane.f32.xlu0 %v1647_v58  ;;  %vm1624_vm8 = vcmp.ge.f32.partialorder %v1605_v41, 0.0  ;;  %v1649_v9 = vsel %vm1646_vm1, %v1638_v61, -inf }
 0x65f   :  { %v1632_v63 = vmul.f32 %v1627_v23, %v1600_v34  ;;  %v2127_v3 = vpop.f32.mrb[34].mxu0  ;;  %vm1623_vm7 = vcmp.ge.f32.partialorder %v1600_v34, 0.0 }
 0x660   :  { %v1615_v47 = vadd.f32 %v2127_v3, %v1766_v10  ;;  %v1609_v48 = vpop.f32.mrb[35].mxu0  ;;  %v1641_v11 = vsel %vm1624_vm8, %v1605_v41, %v1633_v60 }
 0x661   :  { %v1610_v0 = vadd.f32 %v1766_v10, %v1609_v48  ;;  %v1640_v5 = vsel %vm1623_vm7, %v1600_v34, %v1632_v63  ;;  %v1652_v15 = vsel %vm1646_vm1, %v1641_v11, -inf }
 0x662   :  { %v1635_v22 = vmul.f32 %v1627_v23, %v1615_v47  ;;  %1659 = vmax.xlane.f32.xlu1 %v1649_v9  ;;  %v1651_v4 = vsel %vm1646_vm1, %v1640_v5, -inf  ;;  %vm1626_vm10 = vcmp.ge.f32.partialorder %v1615_v47, 0.0 }
 0x663   :  { %v1634_v12 = vmul.f32 %v1627_v23, %v1610_v0  ;;  %1663 = vmax.xlane.f32.xlu0 %v1651_v4  ;;  %vm1625_vm9 = vcmp.ge.f32.partialorder %v1610_v0, 0.0 }
 0x664   :  { %v1643_v14 = vsel %vm1626_vm10, %v1615_v47, %v1635_v22 }
 0x665   :  { %v1642_v36 = vsel %vm1625_vm9, %v1610_v0, %v1634_v12  ;;  %v1654_v20 = vsel %vm1646_vm1, %v1643_v14, -inf }
 0x666   :  { %1665 = vmax.xlane.f32.xlu1 %v1652_v15  ;;  %v1653_v19 = vsel %vm1646_vm1, %v1642_v36, -inf }
 0x667   :  { %1667 = vmax.xlane.f32.xlu0 %v1653_v19 }
 0x66a   :  { %1669 = vmax.xlane.f32.xlu1 %v1654_v20 }
 0x6e7   :  { %v1658_v28 = vpop.xlane.xlu0 %1657 }
 0x6e8   :  { %v1672_v30 = vsub.f32 %v1648_v2, %v1658_v28 }
 0x6ea   :  { %v1681_v37 = vmul.f32 1.442695, %v1672_v30 }
 0x6eb   :  { %v1662_v33 = vpop.xlane.xlu1 %1661  ;;  %v1656_v29 = vpop.xlane.xlu0 %1655 }
 0x6ec   :  { %2396 = vpow2.f32 %v1681_v37  ;;  %v1674_v32 = vsub.f32 %v1650_v38, %v1662_v33  ;;  %v1671_v54 = vsub.f32 %v1647_v58, %v1656_v29 }
 0x6ee   :  { %v1685_v1 = vmul.f32 1.442695, %v1674_v32  ;;  %v1679_v55 = vmul.f32 1.442695, %v1671_v54 }
 0x6ef   :  { %v1660_v44 = vpop.xlane.xlu1 %1659 }
 0x6f0   :  { %2398 = vpow2.f32 %v1685_v1  ;;  %v1673_v16 = vsub.f32 %v1649_v9, %v1660_v44  ;;  %v1664_v49 = vpop.xlane.xlu0 %1663 }
 0x6f1   :  { %2400 = vpow2.f32 %v1679_v55  ;;  %v1675_v13 = vsub.f32 %v1651_v4, %v1664_v49 }
 0x6f2   :  { %v1683_v17 = vmul.f32 1.442695, %v1673_v16 }
 0x6f3   :  { %v1666_v18 = vpop.xlane.xlu1 %1665  ;;  %v1687_v7 = vmul.f32 1.442695, %v1675_v13 }
 0x6f4   :  { %2402 = vpow2.f32 %v1683_v17  ;;  %v1676_v59 = vsub.f32 %v1652_v15, %v1666_v18  ;;  %v1668_v46 = vpop.xlane.xlu0 %1667 }
 0x6f5   :  { %v1677_v8 = vsub.f32 %v1653_v19, %v1668_v46 }
 0x6f6   :  { %v2397_v39 = vpop.eup %2396  ;;  %v1689_v53 = vmul.f32 1.442695, %v1676_v59 }
 0x6f7   :  { %1697 = vadd.xlane.f32.xlu1 %v2397_v39  ;;  %v1670_v10 = vpop.xlane.xlu1 %1669  ;;  %v1691_v21 = vmul.f32 1.442695, %v1677_v8 }
 0x6f8   :  { %2404 = vpow2.f32 %v1689_v53  ;;  %v1678_v6 = vsub.f32 %v1654_v20, %v1670_v10 }
 0x6f9   :  { %2406 = vpow2.f32 %v1687_v7 }
 0x6fa   :  { %v2399_v23 = vpop.eup %2398  ;;  %v1693_v25 = vmul.f32 1.442695, %v1678_v6 }
 0x6fb   :  { %v2401_v52 = vpop.eup %2400  ;;  %1701 = vadd.xlane.f32.xlu1 %v2399_v23 }
 0x6fc   :  { %2408 = vpow2.f32 %v1693_v25  ;;  %1695 = vadd.xlane.f32.xlu0 %v2401_v52 }
 0x6fd   :  { %2410 = vpow2.f32 %v1691_v21 }
 0x6fe   :  { %v2403_v43 = vpop.eup %2402 }
 0x700   :  { %1699 = vadd.xlane.f32.xlu0 %v2403_v43 }
 0x702   :  { %v2405_v45 = vpop.eup %2404 }
 0x703   :  { %v2407_v50 = vpop.eup %2406  ;;  %1705 = vadd.xlane.f32.xlu1 %v2405_v45 }
 0x704   :  { %1703 = vadd.xlane.f32.xlu0 %v2407_v50 }
 0x706   :  { %v2409_v26 = vpop.eup %2408 }
 0x707   :  { %v2411_v40 = vpop.eup %2410  ;;  %1709 = vadd.xlane.f32.xlu1 %v2409_v26 }
 0x708   :  { %1707 = vadd.xlane.f32.xlu0 %v2411_v40 }
 0x784   :  { %v1698_v27 = vpop.xlane.xlu1 %1697 }
 0x785   :  { %2412 = vrcp.f32 %v1698_v27 }
 0x788   :  { %v1702_v31 = vpop.xlane.xlu1 %1701 }
 0x789   :  { %2414 = vrcp.f32 %v1702_v31  ;;  %v1696_v35 = vpop.xlane.xlu0 %1695 }
 0x78a   :  { %2416 = vrcp.f32 %v1696_v35 }
 0x78d   :  { %v1700_v2 = vpop.xlane.xlu0 %1699 }
 0x78e   :  { %2418 = vrcp.f32 %v1700_v2 }
 0x78f   :  { %v2413_v57 = vpop.eup %2412 }
 0x790   :  { %v1720_v51 = vmul.f32 %v2413_v57, %v2397_v39  ;;  %v1706_v62 = vpop.xlane.xlu1 %1705 }
 0x791   :  { %2420 = vrcp.f32 %v1706_v62  ;;  %v1704_v42 = vpop.xlane.xlu0 %1703 }
 0x792   :  { %1728 = vst [vmem:[#allocation13 + $0x8] sm:$0xff] %v1720_v51  ;;  %2422 = vrcp.f32 %v1704_v42 }
 0x793   :  { %v2415_v41 = vpop.eup %2414 }
 0x794   :  { %v2417_v56 = vpop.eup %2416  ;;  %v1722_v24 = vmul.f32 %v2415_v41, %v2399_v23  ;;  %v1710_v34 = vpop.xlane.xlu1 %1709 }
 0x795   :  { %v1719_v38 = vmul.f32 %v2417_v56, %v2401_v52  ;;  %2424 = vrcp.f32 %v1710_v34  ;;  %v1708_v58 = vpop.xlane.xlu0 %1707 }
 0x796   :  { %1730 = vst [vmem:[#allocation13 + $0x18] sm:$0xff] %v1722_v24  ;;  %2426 = vrcp.f32 %v1708_v58 }
 0x797   :  { %1727 = vst [vmem:[#allocation13] sm:$0xff] %v1719_v38 }
 0x798   :  { %v2419_v60 = vpop.eup %2418 }
 0x799   :  { %v1721_v61 = vmul.f32 %v2419_v60, %v2403_v43 }
 0x79b   :  { %v2421_v63 = vpop.eup %2420  ;;  %1729 = vst [vmem:[#allocation13 + $0x10] sm:$0xff] %v1721_v61 }
 0x79c   :  { %v2423_v3 = vpop.eup %2422  ;;  %v1724_v47 = vmul.f32 %v2421_v63, %v2405_v45 }
 0x79d   :  { %v1723_v48 = vmul.f32 %v2423_v3, %v2407_v50 }
 0x79e   :  { %1732 = vst [vmem:[#allocation13 + $0x28] sm:$0xff] %v1724_v47 }
 0x79f   :  { %v2425_v0 = vpop.eup %2424  ;;  %1731 = vst [vmem:[#allocation13 + $0x20] sm:$0xff] %v1723_v48 }
 0x7a0   :  { %v2427_v9 = vpop.eup %2426  ;;  %v1726_v5 = vmul.f32 %v2425_v0, %v2409_v26 }
 0x7a1   :  { %v1725_v22 = vmul.f32 %v2427_v9, %v2411_v40 }
 0x7a2   :  { %1734 = vst [vmem:[#allocation13 + $0x38] sm:$0xff] %v1726_v5 }
 0x7a3   :  { %1733 = vst [vmem:[#allocation13 + $0x30] sm:$0xff] %v1725_v22 }
 0x7a4   :  { %2559 = shalt.err (!%p2556_p5)
}
 0x7a5   :  { %s2560_s26 = scalar_lea.hbm %s3117_s6, 1024 }
 0x7a6   :  { %p2561_p6 = scmp.ne.s32.totalorder %s3117_s6, %s2560_s26  ;;  %p2564_p7 = scmp.lt.u32.totalorder %s2560_s26, %s3117_s6 }
 0x7a8   :  { %p2566_p8 = pnand %p2564_p7, %p2561_p6 }
 0x7aa   :  { %2569 = shalt.err (!%p2566_p8)
}
 0x7ab   :  { %1746 = dma.vmem_to_hbm [thread:$0]  %s1741_s22, 1024, %s3117_s6, [#allocation4], %s2582_s2, %s2582_s2, %s2583_s20  }
 0x7ac   :  { %2578 = dma.done.wait [#allocation4], 1024  }
 0x7ad   :  { %2579 = vsyncadd [#allocation4], 4294966272 }
 0x7ae   :  { %1750 = vsyncpa [#allocation3], 1 }
 0x7af   :  { %1751 = vsyncpa [#allocation8], 1 }
 0x7b0   :  { %1752 = vsyncpa [#allocation11], 1 }
 0x7b1   :  { %1753 = vsyncpa [#allocation4], 1 }
 0x7b2   :  { %1754 = vsyncpa [#allocation5], 1 }

</bundles_post_ra>
